<compile_context>
chip_gen: v7x
topology: tpu7x:2x2x1
jax: 0.10.0
libtpu: 0.0.40
codegen_flags: <defaults>
</compile_context>

<pallas_src>
import jax
import jax.numpy as jnp
import numpy as np
from jax.experimental import pallas as pl
from jax.experimental.pallas import tpu as pltpu


def _attn_encoder_kernel(x_ref, wih_ref, whh_ref, b_ref,
                         wah_ref, wac_ref, wax_ref, bax_ref, out_ref):
    """Entire AttnEncoder forward in one invocation.

    x_ref  : (B, T, D)  VMEM  input series, PyTorch layout (batch, time, series)
    wih_ref: (D, 4H)    VMEM  LSTM input->gates weight (transposed)
    whh_ref: (H, 4H)    VMEM  LSTM hidden->gates weight (transposed)
    b_ref  : (1, 4H)    VMEM  b_ih + b_hh
    wah_ref: (1, H)     VMEM  attn_linear weight, hidden part
    wac_ref: (1, H)     VMEM  attn_linear weight, cell part
    wax_ref: (T,)       SMEM  attn_linear weight, time-series part (scalars)
    bax_ref: (1,)       SMEM  attn_linear bias (scalar)
    out_ref: (B, T*H)   VMEM  lane-dense output slab; out[:, t*H:(t+1)*H] = h_t
    """
    B, T, D = x_ref.shape
    H = whh_ref.shape[0]

    # ---- hoisted loads (once per call) -------------------------------------
    x = x_ref[...]          # (B, T, D)
    w_ih = wih_ref[...]     # (D, 4H)
    w_hh = whh_ref[...]     # (H, 4H)
    bias = b_ref[...]       # (1, 4H)
    w_ah = wah_ref[...]     # (1, H)
    w_ac = wac_ref[...]     # (1, H)

    # ---- time-invariant part of the attention logits (hoisted) -------------
    #   score_x[b, d] = sum_t x[b, t, d] * w_x[t] + b_attn
    # Tiny static loop, executed once per call; scalar factors come from SMEM.
    score_x = jnp.full((B, D), bax_ref[0], dtype=jnp.float32)
    for t in range(T):
        score_x = score_x + x[:, t, :] * wax_ref[t]

    h = jnp.zeros((B, H), jnp.float32)
    c = jnp.zeros((B, H), jnp.float32)

    # ---- fully unrolled recurrence over T (T is static & small) ------------
    for t in range(T):
        # Input attention over the D driving series.  PyTorch repeats h/c
        # across series, so their contribution is identical for every series
        # (softmax-shift invariant); it is kept for exact fidelity with the
        # reference module and costs one small XLU reduce per step.
        hc = jnp.sum(h * w_ah + c * w_ac, axis=-1, keepdims=True)   # (B, 1)
        s = score_x + hc                                            # (B, D)
        s = s - jnp.max(s, axis=-1, keepdims=True)                  # stable softmax
        e = jnp.exp(s)
        attn = e / jnp.sum(e, axis=-1, keepdims=True)               # (B, D)
        weighted = attn * x[:, t, :]                                # (B, D)

        # LSTM cell, PyTorch gate order (i, f, g, o).
        gates = (
            jnp.dot(weighted, w_ih, preferred_element_type=jnp.float32)
            + jnp.dot(h, w_hh, preferred_element_type=jnp.float32)
            + bias
        )                                                           # (B, 4H)

        # Full-width non-linearities (no 64-lane masked EUP slices).
        sig = jax.nn.sigmoid(gates)
        th = jnp.tanh(gates)
        i_g = sig[:, 0 * H:1 * H]
        f_g = sig[:, 1 * H:2 * H]
        g_g = th[:, 2 * H:3 * H]
        o_g = sig[:, 3 * H:4 * H]

        c = f_g * c + i_g * g_g
        h = o_g * jnp.tanh(c)

        # Static-offset store into the lane-dense output slab; HBM writeback
        # happens once at the end of this single kernel invocation.
        out_ref[:, t * H:(t + 1) * H] = h


@jax.jit
def attn_encoder_forward(input_data, w_ih, w_hh, b_ih, b_hh, w_attn, b_attn):
    """input_data: (B, T, D_in) f32 -> encoded hidden states (B, T, H) f32."""
    B, T, D = input_data.shape
    H = w_hh.shape[1]

    wih_t = jnp.transpose(w_ih).astype(jnp.float32)                 # (D, 4H)
    whh_t = jnp.transpose(w_hh).astype(jnp.float32)                 # (H, 4H)
    bias = (b_ih + b_hh).reshape(1, 4 * H).astype(jnp.float32)      # (1, 4H)
    w_ah = w_attn[:, :H].astype(jnp.float32)                        # (1, H)
    w_ac = w_attn[:, H:2 * H].astype(jnp.float32)                   # (1, H)
    w_ax = w_attn[0, 2 * H:].astype(jnp.float32)                    # (T,)  SMEM scalars
    b_ax = b_attn.reshape(1).astype(jnp.float32)                    # (1,)  SMEM scalar

    vmem = pltpu.MemorySpace.VMEM
    smem = pltpu.MemorySpace.SMEM

    out2d = pl.pallas_call(
        _attn_encoder_kernel,
        out_shape=jax.ShapeDtypeStruct((B, T * H), jnp.float32),
        in_specs=[
            pl.BlockSpec(memory_space=vmem),   # x              (B, T, D)
            pl.BlockSpec(memory_space=vmem),   # W_ih^T         (D, 4H)
            pl.BlockSpec(memory_space=vmem),   # W_hh^T         (H, 4H)
            pl.BlockSpec(memory_space=vmem),   # b_ih + b_hh    (1, 4H)
            pl.BlockSpec(memory_space=vmem),   # attn w_h       (1, H)
            pl.BlockSpec(memory_space=vmem),   # attn w_c       (1, H)
            pl.BlockSpec(memory_space=smem),   # attn w_x       (T,) scalars
            pl.BlockSpec(memory_space=smem),   # attn bias      (1,) scalar
        ],
        out_specs=pl.BlockSpec(memory_space=vmem),
    )(input_data, wih_t, whh_t, bias, w_ah, w_ac, w_ax, b_ax)

    # Contiguous reshape (no data movement).
    return out2d.reshape(B, T, H)


def _reference_attn_encoder(x, w_ih, w_hh, b_ih, b_hh, w_attn, b_attn):
    """Pure-JAX faithful translation of AttnEncoder.forward (for checking)."""
    B, T, D = x.shape
    H = w_hh.shape[1]
    hp = jax.lax.Precision.HIGHEST
    h = jnp.zeros((B, H), jnp.float32)
    c = jnp.zeros((B, H), jnp.float32)
    x_perm = jnp.transpose(x, (0, 2, 1))                            # (B, D, T)
    outs = []
    for t in range(T):
        h_rep = jnp.broadcast_to(h[:, None, :], (B, D, H))
        c_rep = jnp.broadcast_to(c[:, None, :], (B, D, H))
        z = jnp.concatenate([h_rep, c_rep, x_perm], axis=2).reshape(B * D, 2 * H + T)
        score = jnp.dot(z, w_attn.T, precision=hp) + b_attn         # (B*D, 1)
        attn = jax.nn.softmax(score.reshape(B, D), axis=1)          # (B, D)
        weighted = attn * x[:, t, :]                                # (B, D)
        gates = weighted @ w_ih.T + h @ w_hh.T + b_ih + b_hh        # (B, 4H)
        i_g = jax.nn.sigmoid(gates[:, 0 * H:1 * H])
        f_g = jax.nn.sigmoid(gates[:, 1 * H:2 * H])
        g_g = jnp.tanh(gates[:, 2 * H:3 * H])
        o_g = jax.nn.sigmoid(gates[:, 3 * H:4 * H])
        c = f_g * c + i_g * g_g
        h = o_g * jnp.tanh(c)
        outs.append(h)
    return jnp.stack(outs, axis=1)                                  # (B, T, H)


if __name__ == "__main__":
    # Module defaults: input_size=22, hidden_size=64, num_layers=1, T=12.
    B, T, D_IN, H = 2, 12, 22, 64

    key = jax.random.PRNGKey(0)
    k_x, k_wih, k_whh, k_bih, k_bhh, k_wat, k_bat = jax.random.split(key, 7)

    # PyTorch-style uniform init bounds.
    bound = 1.0 / np.sqrt(H)
    w_ih = jax.random.uniform(k_wih, (4 * H, D_IN), jnp.float32, -bound, bound)
    w_hh = jax.random.uniform(k_whh, (4 * H, H), jnp.float32, -bound, bound)
    b_ih = jax.random.uniform(k_bih, (4 * H,), jnp.float32, -bound, bound)
    b_hh = jax.random.uniform(k_bhh, (4 * H,), jnp.float32, -bound, bound)

    attn_in = 2 * H + T
    a_bound = 1.0 / np.sqrt(attn_in)
    w_attn = jax.random.uniform(k_wat, (1, attn_in), jnp.float32, -a_bound, a_bound)
    b_attn = jax.random.uniform(k_bat, (1,), jnp.float32, -a_bound, a_bound)

    x = jax.random.normal(k_x, (B, T, D_IN), jnp.float32)

    out = attn_encoder_forward(x, w_ih, w_hh, b_ih, b_hh, w_attn, b_attn)
    out = jax.block_until_ready(out)

    ref = _reference_attn_encoder(x, w_ih, w_hh, b_ih, b_hh, w_attn, b_attn)
    assert out.shape == (B, T, H)
    # Tolerance covers f32 summation-order differences (kernel decomposes the
    # attn_linear into its h/c/x sub-blocks instead of one concat+matmul).
    np.testing.assert_allclose(np.asarray(out), np.asarray(ref),
                               atol=2e-4, rtol=2e-4)

    print("KERNEL_OK")
</pallas_src>

<mosaic_0001>
module attributes {stable_mosaic.version = 11 : i64} {
  func.func @_attn_encoder_kernel(%arg0: memref<2x12x22xf32, #tpu.memory_space<vmem>>, %arg1: memref<22x256xf32, #tpu.memory_space<vmem>>, %arg2: memref<64x256xf32, #tpu.memory_space<vmem>>, %arg3: memref<1x256xf32, #tpu.memory_space<vmem>>, %arg4: memref<1x64xf32, #tpu.memory_space<vmem>>, %arg5: memref<1x64xf32, #tpu.memory_space<vmem>>, %arg6: memref<12xf32, #tpu.memory_space<smem>>, %arg7: memref<1xf32, #tpu.memory_space<smem>>, %arg8: memref<2x768xf32, #tpu.memory_space<vmem>>) attributes {dimension_semantics = [], scalar_prefetch = 0 : i64, scratch_operands = 0 : i64, tpu.core_type = #tpu.core_type<tc>} {
    %c0 = arith.constant 0 : index
    %c0_0 = arith.constant 0 : index
    %c0_1 = arith.constant 0 : index
    %0 = vector.load %arg0[%c0, %c0_0, %c0_1] : memref<2x12x22xf32, #tpu.memory_space<vmem>>, vector<2x12x22xf32>
    %c0_2 = arith.constant 0 : index
    %c0_3 = arith.constant 0 : index
    %1 = vector.load %arg1[%c0_2, %c0_3] : memref<22x256xf32, #tpu.memory_space<vmem>>, vector<22x256xf32>
    %c0_4 = arith.constant 0 : index
    %c0_5 = arith.constant 0 : index
    %2 = vector.load %arg2[%c0_4, %c0_5] : memref<64x256xf32, #tpu.memory_space<vmem>>, vector<64x256xf32>
    %c0_6 = arith.constant 0 : index
    %c0_7 = arith.constant 0 : index
    %3 = vector.load %arg3[%c0_6, %c0_7] : memref<1x256xf32, #tpu.memory_space<vmem>>, vector<1x256xf32>
    %c0_8 = arith.constant 0 : index
    %c0_9 = arith.constant 0 : index
    %4 = vector.load %arg4[%c0_8, %c0_9] : memref<1x64xf32, #tpu.memory_space<vmem>>, vector<1x64xf32>
    %c0_10 = arith.constant 0 : index
    %c0_11 = arith.constant 0 : index
    %5 = vector.load %arg5[%c0_10, %c0_11] : memref<1x64xf32, #tpu.memory_space<vmem>>, vector<1x64xf32>
    %c0_12 = arith.constant 0 : index
    %6 = memref.load %arg7[%c0_12] : memref<1xf32, #tpu.memory_space<smem>>
    %7 = vector.broadcast %6 : f32 to vector<2x22xf32>
    %8 = vector.extract_strided_slice %0 {offsets = [0, 0, 0], sizes = [2, 1, 22], strides = [1, 1, 1]} : vector<2x12x22xf32> to vector<2x1x22xf32>
    %9 = vector.shape_cast %8 : vector<2x1x22xf32> to vector<2x22xf32>
    %c0_13 = arith.constant 0 : index
    %10 = memref.load %arg6[%c0_13] : memref<12xf32, #tpu.memory_space<smem>>
    %11 = vector.broadcast %10 : f32 to vector<2x22xf32>
    %12 = arith.mulf %9, %11 : vector<2x22xf32>
    %13 = arith.addf %7, %12 : vector<2x22xf32>
    %14 = vector.extract_strided_slice %0 {offsets = [0, 1, 0], sizes = [2, 1, 22], strides = [1, 1, 1]} : vector<2x12x22xf32> to vector<2x1x22xf32>
    %15 = vector.shape_cast %14 : vector<2x1x22xf32> to vector<2x22xf32>
    %c1 = arith.constant 1 : index
    %16 = memref.load %arg6[%c1] : memref<12xf32, #tpu.memory_space<smem>>
    %17 = vector.broadcast %16 : f32 to vector<2x22xf32>
    %18 = arith.mulf %15, %17 : vector<2x22xf32>
    %19 = arith.addf %13, %18 : vector<2x22xf32>
    %20 = vector.extract_strided_slice %0 {offsets = [0, 2, 0], sizes = [2, 1, 22], strides = [1, 1, 1]} : vector<2x12x22xf32> to vector<2x1x22xf32>
    %21 = vector.shape_cast %20 : vector<2x1x22xf32> to vector<2x22xf32>
    %c2 = arith.constant 2 : index
    %22 = memref.load %arg6[%c2] : memref<12xf32, #tpu.memory_space<smem>>
    %23 = vector.broadcast %22 : f32 to vector<2x22xf32>
    %24 = arith.mulf %21, %23 : vector<2x22xf32>
    %25 = arith.addf %19, %24 : vector<2x22xf32>
    %26 = vector.extract_strided_slice %0 {offsets = [0, 3, 0], sizes = [2, 1, 22], strides = [1, 1, 1]} : vector<2x12x22xf32> to vector<2x1x22xf32>
    %27 = vector.shape_cast %26 : vector<2x1x22xf32> to vector<2x22xf32>
    %c3 = arith.constant 3 : index
    %28 = memref.load %arg6[%c3] : memref<12xf32, #tpu.memory_space<smem>>
    %29 = vector.broadcast %28 : f32 to vector<2x22xf32>
    %30 = arith.mulf %27, %29 : vector<2x22xf32>
    %31 = arith.addf %25, %30 : vector<2x22xf32>
    %32 = vector.extract_strided_slice %0 {offsets = [0, 4, 0], sizes = [2, 1, 22], strides = [1, 1, 1]} : vector<2x12x22xf32> to vector<2x1x22xf32>
    %33 = vector.shape_cast %32 : vector<2x1x22xf32> to vector<2x22xf32>
    %c4 = arith.constant 4 : index
    %34 = memref.load %arg6[%c4] : memref<12xf32, #tpu.memory_space<smem>>
    %35 = vector.broadcast %34 : f32 to vector<2x22xf32>
    %36 = arith.mulf %33, %35 : vector<2x22xf32>
    %37 = arith.addf %31, %36 : vector<2x22xf32>
    %38 = vector.extract_strided_slice %0 {offsets = [0, 5, 0], sizes = [2, 1, 22], strides = [1, 1, 1]} : vector<2x12x22xf32> to vector<2x1x22xf32>
    %39 = vector.shape_cast %38 : vector<2x1x22xf32> to vector<2x22xf32>
    %c5 = arith.constant 5 : index
    %40 = memref.load %arg6[%c5] : memref<12xf32, #tpu.memory_space<smem>>
    %41 = vector.broadcast %40 : f32 to vector<2x22xf32>
    %42 = arith.mulf %39, %41 : vector<2x22xf32>
    %43 = arith.addf %37, %42 : vector<2x22xf32>
    %44 = vector.extract_strided_slice %0 {offsets = [0, 6, 0], sizes = [2, 1, 22], strides = [1, 1, 1]} : vector<2x12x22xf32> to vector<2x1x22xf32>
    %45 = vector.shape_cast %44 : vector<2x1x22xf32> to vector<2x22xf32>
    %c6 = arith.constant 6 : index
    %46 = memref.load %arg6[%c6] : memref<12xf32, #tpu.memory_space<smem>>
    %47 = vector.broadcast %46 : f32 to vector<2x22xf32>
    %48 = arith.mulf %45, %47 : vector<2x22xf32>
    %49 = arith.addf %43, %48 : vector<2x22xf32>
    %50 = vector.extract_strided_slice %0 {offsets = [0, 7, 0], sizes = [2, 1, 22], strides = [1, 1, 1]} : vector<2x12x22xf32> to vector<2x1x22xf32>
    %51 = vector.shape_cast %50 : vector<2x1x22xf32> to vector<2x22xf32>
    %c7 = arith.constant 7 : index
    %52 = memref.load %arg6[%c7] : memref<12xf32, #tpu.memory_space<smem>>
    %53 = vector.broadcast %52 : f32 to vector<2x22xf32>
    %54 = arith.mulf %51, %53 : vector<2x22xf32>
    %55 = arith.addf %49, %54 : vector<2x22xf32>
    %56 = vector.extract_strided_slice %0 {offsets = [0, 8, 0], sizes = [2, 1, 22], strides = [1, 1, 1]} : vector<2x12x22xf32> to vector<2x1x22xf32>
    %57 = vector.shape_cast %56 : vector<2x1x22xf32> to vector<2x22xf32>
    %c8 = arith.constant 8 : index
    %58 = memref.load %arg6[%c8] : memref<12xf32, #tpu.memory_space<smem>>
    %59 = vector.broadcast %58 : f32 to vector<2x22xf32>
    %60 = arith.mulf %57, %59 : vector<2x22xf32>
    %61 = arith.addf %55, %60 : vector<2x22xf32>
    %62 = vector.extract_strided_slice %0 {offsets = [0, 9, 0], sizes = [2, 1, 22], strides = [1, 1, 1]} : vector<2x12x22xf32> to vector<2x1x22xf32>
    %63 = vector.shape_cast %62 : vector<2x1x22xf32> to vector<2x22xf32>
    %c9 = arith.constant 9 : index
    %64 = memref.load %arg6[%c9] : memref<12xf32, #tpu.memory_space<smem>>
    %65 = vector.broadcast %64 : f32 to vector<2x22xf32>
    %66 = arith.mulf %63, %65 : vector<2x22xf32>
    %67 = arith.addf %61, %66 : vector<2x22xf32>
    %68 = vector.extract_strided_slice %0 {offsets = [0, 10, 0], sizes = [2, 1, 22], strides = [1, 1, 1]} : vector<2x12x22xf32> to vector<2x1x22xf32>
    %69 = vector.shape_cast %68 : vector<2x1x22xf32> to vector<2x22xf32>
    %c10 = arith.constant 10 : index
    %70 = memref.load %arg6[%c10] : memref<12xf32, #tpu.memory_space<smem>>
    %71 = vector.broadcast %70 : f32 to vector<2x22xf32>
    %72 = arith.mulf %69, %71 : vector<2x22xf32>
    %73 = arith.addf %67, %72 : vector<2x22xf32>
    %74 = vector.extract_strided_slice %0 {offsets = [0, 11, 0], sizes = [2, 1, 22], strides = [1, 1, 1]} : vector<2x12x22xf32> to vector<2x1x22xf32>
    %75 = vector.shape_cast %74 : vector<2x1x22xf32> to vector<2x22xf32>
    %c11 = arith.constant 11 : index
    %76 = memref.load %arg6[%c11] : memref<12xf32, #tpu.memory_space<smem>>
    %77 = vector.broadcast %76 : f32 to vector<2x22xf32>
    %78 = arith.mulf %75, %77 : vector<2x22xf32>
    %79 = arith.addf %73, %78 : vector<2x22xf32>
    %cst = arith.constant 0.000000e+00 : f32
    %80 = vector.broadcast %cst : f32 to vector<2x64xf32>
    %cst_14 = arith.constant 0.000000e+00 : f32
    %81 = vector.broadcast %cst_14 : f32 to vector<2x64xf32>
    %82 = vector.broadcast %4 : vector<1x64xf32> to vector<2x64xf32>
    %83 = arith.mulf %80, %82 : vector<2x64xf32>
    %84 = vector.broadcast %5 : vector<1x64xf32> to vector<2x64xf32>
    %85 = arith.mulf %81, %84 : vector<2x64xf32>
    %86 = arith.addf %83, %85 : vector<2x64xf32>
    %cst_15 = arith.constant dense<0.000000e+00> : vector<2xf32>
    %87 = vector.multi_reduction <add>, %86, %cst_15 [1] : vector<2x64xf32> to vector<2xf32>
    %88 = vector.shape_cast %87 : vector<2xf32> to vector<2x1xf32>
    %89 = vector.broadcast %88 : vector<2x1xf32> to vector<2x22xf32>
    %90 = arith.addf %79, %89 : vector<2x22xf32>
    %cst_16 = arith.constant dense<0xFF800000> : vector<2xf32>
    %91 = vector.multi_reduction <maximumf>, %90, %cst_16 [1] : vector<2x22xf32> to vector<2xf32>
    %92 = vector.shape_cast %91 : vector<2xf32> to vector<2x1xf32>
    %93 = vector.broadcast %92 : vector<2x1xf32> to vector<2x22xf32>
    %94 = arith.subf %90, %93 : vector<2x22xf32>
    %95 = math.exp %94 : vector<2x22xf32>
    %cst_17 = arith.constant dense<0.000000e+00> : vector<2xf32>
    %96 = vector.multi_reduction <add>, %95, %cst_17 [1] : vector<2x22xf32> to vector<2xf32>
    %97 = vector.shape_cast %96 : vector<2xf32> to vector<2x1xf32>
    %98 = vector.broadcast %97 : vector<2x1xf32> to vector<2x22xf32>
    %99 = arith.divf %95, %98 : vector<2x22xf32>
    %100 = vector.extract_strided_slice %0 {offsets = [0, 0, 0], sizes = [2, 1, 22], strides = [1, 1, 1]} : vector<2x12x22xf32> to vector<2x1x22xf32>
    %101 = vector.shape_cast %100 : vector<2x1x22xf32> to vector<2x22xf32>
    %102 = arith.mulf %99, %101 : vector<2x22xf32>
    %cst_18 = arith.constant dense<0.000000e+00> : vector<2x256xf32>
    %103 = tpu.matmul %102, %1, %cst_18 {dimension_numbers = #tpu.dot_dimension_numbers<[1], [0], [0], [1], [0, 0, 1, 1], [], []>} : vector<2x22xf32>, vector<22x256xf32>, vector<2x256xf32> -> vector<2x256xf32>
    %cst_19 = arith.constant dense<0.000000e+00> : vector<2x256xf32>
    %104 = tpu.matmul %80, %2, %cst_19 {dimension_numbers = #tpu.dot_dimension_numbers<[1], [0], [0], [1], [0, 0, 1, 1], [], []>} : vector<2x64xf32>, vector<64x256xf32>, vector<2x256xf32> -> vector<2x256xf32>
    %105 = arith.addf %103, %104 : vector<2x256xf32>
    %106 = vector.broadcast %3 : vector<1x256xf32> to vector<2x256xf32>
    %107 = arith.addf %105, %106 : vector<2x256xf32>
    %108 = arith.negf %107 : vector<2x256xf32>
    %109 = math.exp %108 : vector<2x256xf32>
    %cst_20 = arith.constant 1.000000e+00 : f32
    %110 = vector.broadcast %cst_20 : f32 to vector<2x256xf32>
    %111 = arith.addf %110, %109 : vector<2x256xf32>
    %112 = arith.divf %110, %111 : vector<2x256xf32>
    %113 = math.tanh %107 : vector<2x256xf32>
    %114 = vector.extract_strided_slice %112 {offsets = [0, 0], sizes = [2, 64], strides = [1, 1]} : vector<2x256xf32> to vector<2x64xf32>
    %115 = vector.extract_strided_slice %112 {offsets = [0, 64], sizes = [2, 64], strides = [1, 1]} : vector<2x256xf32> to vector<2x64xf32>
    %116 = vector.extract_strided_slice %113 {offsets = [0, 128], sizes = [2, 64], strides = [1, 1]} : vector<2x256xf32> to vector<2x64xf32>
    %117 = vector.extract_strided_slice %112 {offsets = [0, 192], sizes = [2, 64], strides = [1, 1]} : vector<2x256xf32> to vector<2x64xf32>
    %118 = arith.mulf %115, %81 : vector<2x64xf32>
    %119 = arith.mulf %114, %116 : vector<2x64xf32>
    %120 = arith.addf %118, %119 : vector<2x64xf32>
    %121 = math.tanh %120 : vector<2x64xf32>
    %122 = arith.mulf %117, %121 : vector<2x64xf32>
    %c0_21 = arith.constant 0 : index
    %c0_22 = arith.constant 0 : index
    %123 = vector.load %arg8[%c0_21, %c0_22] : memref<2x768xf32, #tpu.memory_space<vmem>>, vector<2x64xf32>
    tpu.vector_store %arg8[%c0_21, %c0_22], %122 {strides = array<i32>} : memref<2x768xf32, #tpu.memory_space<vmem>>, vector<2x64xf32>,
    %124 = vector.broadcast %4 : vector<1x64xf32> to vector<2x64xf32>
    %125 = arith.mulf %122, %124 : vector<2x64xf32>
    %126 = vector.broadcast %5 : vector<1x64xf32> to vector<2x64xf32>
    %127 = arith.mulf %120, %126 : vector<2x64xf32>
    %128 = arith.addf %125, %127 : vector<2x64xf32>
    %cst_23 = arith.constant dense<0.000000e+00> : vector<2xf32>
    %129 = vector.multi_reduction <add>, %128, %cst_23 [1] : vector<2x64xf32> to vector<2xf32>
    %130 = vector.shape_cast %129 : vector<2xf32> to vector<2x1xf32>
    %131 = vector.broadcast %130 : vector<2x1xf32> to vector<2x22xf32>
    %132 = arith.addf %79, %131 : vector<2x22xf32>
    %cst_24 = arith.constant dense<0xFF800000> : vector<2xf32>
    %133 = vector.multi_reduction <maximumf>, %132, %cst_24 [1] : vector<2x22xf32> to vector<2xf32>
    %134 = vector.shape_cast %133 : vector<2xf32> to vector<2x1xf32>
    %135 = vector.broadcast %134 : vector<2x1xf32> to vector<2x22xf32>
    %136 = arith.subf %132, %135 : vector<2x22xf32>
    %137 = math.exp %136 : vector<2x22xf32>
    %cst_25 = arith.constant dense<0.000000e+00> : vector<2xf32>
    %138 = vector.multi_reduction <add>, %137, %cst_25 [1] : vector<2x22xf32> to vector<2xf32>
    %139 = vector.shape_cast %138 : vector<2xf32> to vector<2x1xf32>
    %140 = vector.broadcast %139 : vector<2x1xf32> to vector<2x22xf32>
    %141 = arith.divf %137, %140 : vector<2x22xf32>
    %142 = vector.extract_strided_slice %0 {offsets = [0, 1, 0], sizes = [2, 1, 22], strides = [1, 1, 1]} : vector<2x12x22xf32> to vector<2x1x22xf32>
    %143 = vector.shape_cast %142 : vector<2x1x22xf32> to vector<2x22xf32>
    %144 = arith.mulf %141, %143 : vector<2x22xf32>
    %cst_26 = arith.constant dense<0.000000e+00> : vector<2x256xf32>
    %145 = tpu.matmul %144, %1, %cst_26 {dimension_numbers = #tpu.dot_dimension_numbers<[1], [0], [0], [1], [0, 0, 1, 1], [], []>} : vector<2x22xf32>, vector<22x256xf32>, vector<2x256xf32> -> vector<2x256xf32>
    %cst_27 = arith.constant dense<0.000000e+00> : vector<2x256xf32>
    %146 = tpu.matmul %122, %2, %cst_27 {dimension_numbers = #tpu.dot_dimension_numbers<[1], [0], [0], [1], [0, 0, 1, 1], [], []>} : vector<2x64xf32>, vector<64x256xf32>, vector<2x256xf32> -> vector<2x256xf32>
    %147 = arith.addf %145, %146 : vector<2x256xf32>
    %148 = vector.broadcast %3 : vector<1x256xf32> to vector<2x256xf32>
    %149 = arith.addf %147, %148 : vector<2x256xf32>
    %150 = arith.negf %149 : vector<2x256xf32>
    %151 = math.exp %150 : vector<2x256xf32>
    %cst_28 = arith.constant 1.000000e+00 : f32
    %152 = vector.broadcast %cst_28 : f32 to vector<2x256xf32>
    %153 = arith.addf %152, %151 : vector<2x256xf32>
    %154 = arith.divf %152, %153 : vector<2x256xf32>
    %155 = math.tanh %149 : vector<2x256xf32>
    %156 = vector.extract_strided_slice %154 {offsets = [0, 0], sizes = [2, 64], strides = [1, 1]} : vector<2x256xf32> to vector<2x64xf32>
    %157 = vector.extract_strided_slice %154 {offsets = [0, 64], sizes = [2, 64], strides = [1, 1]} : vector<2x256xf32> to vector<2x64xf32>
    %158 = vector.extract_strided_slice %155 {offsets = [0, 128], sizes = [2, 64], strides = [1, 1]} : vector<2x256xf32> to vector<2x64xf32>
    %159 = vector.extract_strided_slice %154 {offsets = [0, 192], sizes = [2, 64], strides = [1, 1]} : vector<2x256xf32> to vector<2x64xf32>
    %160 = arith.mulf %157, %120 : vector<2x64xf32>
    %161 = arith.mulf %156, %158 : vector<2x64xf32>
    %162 = arith.addf %160, %161 : vector<2x64xf32>
    %163 = math.tanh %162 : vector<2x64xf32>
    %164 = arith.mulf %159, %163 : vector<2x64xf32>
    %c0_29 = arith.constant 0 : index
    %c64 = arith.constant 64 : index
    %165 = vector.load %arg8[%c0_29, %c64] : memref<2x768xf32, #tpu.memory_space<vmem>>, vector<2x64xf32>
    tpu.vector_store %arg8[%c0_29, %c64], %164 {strides = array<i32>} : memref<2x768xf32, #tpu.memory_space<vmem>>, vector<2x64xf32>,
    %166 = vector.broadcast %4 : vector<1x64xf32> to vector<2x64xf32>
    %167 = arith.mulf %164, %166 : vector<2x64xf32>
    %168 = vector.broadcast %5 : vector<1x64xf32> to vector<2x64xf32>
    %169 = arith.mulf %162, %168 : vector<2x64xf32>
    %170 = arith.addf %167, %169 : vector<2x64xf32>
    %cst_30 = arith.constant dense<0.000000e+00> : vector<2xf32>
    %171 = vector.multi_reduction <add>, %170, %cst_30 [1] : vector<2x64xf32> to vector<2xf32>
    %172 = vector.shape_cast %171 : vector<2xf32> to vector<2x1xf32>
    %173 = vector.broadcast %172 : vector<2x1xf32> to vector<2x22xf32>
    %174 = arith.addf %79, %173 : vector<2x22xf32>
    %cst_31 = arith.constant dense<0xFF800000> : vector<2xf32>
    %175 = vector.multi_reduction <maximumf>, %174, %cst_31 [1] : vector<2x22xf32> to vector<2xf32>
    %176 = vector.shape_cast %175 : vector<2xf32> to vector<2x1xf32>
    %177 = vector.broadcast %176 : vector<2x1xf32> to vector<2x22xf32>
    %178 = arith.subf %174, %177 : vector<2x22xf32>
    %179 = math.exp %178 : vector<2x22xf32>
    %cst_32 = arith.constant dense<0.000000e+00> : vector<2xf32>
    %180 = vector.multi_reduction <add>, %179, %cst_32 [1] : vector<2x22xf32> to vector<2xf32>
    %181 = vector.shape_cast %180 : vector<2xf32> to vector<2x1xf32>
    %182 = vector.broadcast %181 : vector<2x1xf32> to vector<2x22xf32>
    %183 = arith.divf %179, %182 : vector<2x22xf32>
    %184 = vector.extract_strided_slice %0 {offsets = [0, 2, 0], sizes = [2, 1, 22], strides = [1, 1, 1]} : vector<2x12x22xf32> to vector<2x1x22xf32>
    %185 = vector.shape_cast %184 : vector<2x1x22xf32> to vector<2x22xf32>
    %186 = arith.mulf %183, %185 : vector<2x22xf32>
    %cst_33 = arith.constant dense<0.000000e+00> : vector<2x256xf32>
    %187 = tpu.matmul %186, %1, %cst_33 {dimension_numbers = #tpu.dot_dimension_numbers<[1], [0], [0], [1], [0, 0, 1, 1], [], []>} : vector<2x22xf32>, vector<22x256xf32>, vector<2x256xf32> -> vector<2x256xf32>
    %cst_34 = arith.constant dense<0.000000e+00> : vector<2x256xf32>
    %188 = tpu.matmul %164, %2, %cst_34 {dimension_numbers = #tpu.dot_dimension_numbers<[1], [0], [0], [1], [0, 0, 1, 1], [], []>} : vector<2x64xf32>, vector<64x256xf32>, vector<2x256xf32> -> vector<2x256xf32>
    %189 = arith.addf %187, %188 : vector<2x256xf32>
    %190 = vector.broadcast %3 : vector<1x256xf32> to vector<2x256xf32>
    %191 = arith.addf %189, %190 : vector<2x256xf32>
    %192 = arith.negf %191 : vector<2x256xf32>
    %193 = math.exp %192 : vector<2x256xf32>
    %cst_35 = arith.constant 1.000000e+00 : f32
    %194 = vector.broadcast %cst_35 : f32 to vector<2x256xf32>
    %195 = arith.addf %194, %193 : vector<2x256xf32>
    %196 = arith.divf %194, %195 : vector<2x256xf32>
    %197 = math.tanh %191 : vector<2x256xf32>
    %198 = vector.extract_strided_slice %196 {offsets = [0, 0], sizes = [2, 64], strides = [1, 1]} : vector<2x256xf32> to vector<2x64xf32>
    %199 = vector.extract_strided_slice %196 {offsets = [0, 64], sizes = [2, 64], strides = [1, 1]} : vector<2x256xf32> to vector<2x64xf32>
    %200 = vector.extract_strided_slice %197 {offsets = [0, 128], sizes = [2, 64], strides = [1, 1]} : vector<2x256xf32> to vector<2x64xf32>
    %201 = vector.extract_strided_slice %196 {offsets = [0, 192], sizes = [2, 64], strides = [1, 1]} : vector<2x256xf32> to vector<2x64xf32>
    %202 = arith.mulf %199, %162 : vector<2x64xf32>
    %203 = arith.mulf %198, %200 : vector<2x64xf32>
    %204 = arith.addf %202, %203 : vector<2x64xf32>
    %205 = math.tanh %204 : vector<2x64xf32>
    %206 = arith.mulf %201, %205 : vector<2x64xf32>
    %c0_36 = arith.constant 0 : index
    %c128 = arith.constant 128 : index
    %207 = vector.load %arg8[%c0_36, %c128] : memref<2x768xf32, #tpu.memory_space<vmem>>, vector<2x64xf32>
    tpu.vector_store %arg8[%c0_36, %c128], %206 {strides = array<i32>} : memref<2x768xf32, #tpu.memory_space<vmem>>, vector<2x64xf32>,
    %208 = vector.broadcast %4 : vector<1x64xf32> to vector<2x64xf32>
    %209 = arith.mulf %206, %208 : vector<2x64xf32>
    %210 = vector.broadcast %5 : vector<1x64xf32> to vector<2x64xf32>
    %211 = arith.mulf %204, %210 : vector<2x64xf32>
    %212 = arith.addf %209, %211 : vector<2x64xf32>
    %cst_37 = arith.constant dense<0.000000e+00> : vector<2xf32>
    %213 = vector.multi_reduction <add>, %212, %cst_37 [1] : vector<2x64xf32> to vector<2xf32>
    %214 = vector.shape_cast %213 : vector<2xf32> to vector<2x1xf32>
    %215 = vector.broadcast %214 : vector<2x1xf32> to vector<2x22xf32>
    %216 = arith.addf %79, %215 : vector<2x22xf32>
    %cst_38 = arith.constant dense<0xFF800000> : vector<2xf32>
    %217 = vector.multi_reduction <maximumf>, %216, %cst_38 [1] : vector<2x22xf32> to vector<2xf32>
    %218 = vector.shape_cast %217 : vector<2xf32> to vector<2x1xf32>
    %219 = vector.broadcast %218 : vector<2x1xf32> to vector<2x22xf32>
    %220 = arith.subf %216, %219 : vector<2x22xf32>
    %221 = math.exp %220 : vector<2x22xf32>
    %cst_39 = arith.constant dense<0.000000e+00> : vector<2xf32>
    %222 = vector.multi_reduction <add>, %221, %cst_39 [1] : vector<2x22xf32> to vector<2xf32>
    %223 = vector.shape_cast %222 : vector<2xf32> to vector<2x1xf32>
    %224 = vector.broadcast %223 : vector<2x1xf32> to vector<2x22xf32>
    %225 = arith.divf %221, %224 : vector<2x22xf32>
    %226 = vector.extract_strided_slice %0 {offsets = [0, 3, 0], sizes = [2, 1, 22], strides = [1, 1, 1]} : vector<2x12x22xf32> to vector<2x1x22xf32>
    %227 = vector.shape_cast %226 : vector<2x1x22xf32> to vector<2x22xf32>
    %228 = arith.mulf %225, %227 : vector<2x22xf32>
    %cst_40 = arith.constant dense<0.000000e+00> : vector<2x256xf32>
    %229 = tpu.matmul %228, %1, %cst_40 {dimension_numbers = #tpu.dot_dimension_numbers<[1], [0], [0], [1], [0, 0, 1, 1], [], []>} : vector<2x22xf32>, vector<22x256xf32>, vector<2x256xf32> -> vector<2x256xf32>
    %cst_41 = arith.constant dense<0.000000e+00> : vector<2x256xf32>
    %230 = tpu.matmul %206, %2, %cst_41 {dimension_numbers = #tpu.dot_dimension_numbers<[1], [0], [0], [1], [0, 0, 1, 1], [], []>} : vector<2x64xf32>, vector<64x256xf32>, vector<2x256xf32> -> vector<2x256xf32>
    %231 = arith.addf %229, %230 : vector<2x256xf32>
    %232 = vector.broadcast %3 : vector<1x256xf32> to vector<2x256xf32>
    %233 = arith.addf %231, %232 : vector<2x256xf32>
    %234 = arith.negf %233 : vector<2x256xf32>
    %235 = math.exp %234 : vector<2x256xf32>
    %cst_42 = arith.constant 1.000000e+00 : f32
    %236 = vector.broadcast %cst_42 : f32 to vector<2x256xf32>
    %237 = arith.addf %236, %235 : vector<2x256xf32>
    %238 = arith.divf %236, %237 : vector<2x256xf32>
    %239 = math.tanh %233 : vector<2x256xf32>
    %240 = vector.extract_strided_slice %238 {offsets = [0, 0], sizes = [2, 64], strides = [1, 1]} : vector<2x256xf32> to vector<2x64xf32>
    %241 = vector.extract_strided_slice %238 {offsets = [0, 64], sizes = [2, 64], strides = [1, 1]} : vector<2x256xf32> to vector<2x64xf32>
    %242 = vector.extract_strided_slice %239 {offsets = [0, 128], sizes = [2, 64], strides = [1, 1]} : vector<2x256xf32> to vector<2x64xf32>
    %243 = vector.extract_strided_slice %238 {offsets = [0, 192], sizes = [2, 64], strides = [1, 1]} : vector<2x256xf32> to vector<2x64xf32>
    %244 = arith.mulf %241, %204 : vector<2x64xf32>
    %245 = arith.mulf %240, %242 : vector<2x64xf32>
    %246 = arith.addf %244, %245 : vector<2x64xf32>
    %247 = math.tanh %246 : vector<2x64xf32>
    %248 = arith.mulf %243, %247 : vector<2x64xf32>
    %c0_43 = arith.constant 0 : index
    %c192 = arith.constant 192 : index
    %249 = vector.load %arg8[%c0_43, %c192] : memref<2x768xf32, #tpu.memory_space<vmem>>, vector<2x64xf32>
    tpu.vector_store %arg8[%c0_43, %c192], %248 {strides = array<i32>} : memref<2x768xf32, #tpu.memory_space<vmem>>, vector<2x64xf32>,
    %250 = vector.broadcast %4 : vector<1x64xf32> to vector<2x64xf32>
    %251 = arith.mulf %248, %250 : vector<2x64xf32>
    %252 = vector.broadcast %5 : vector<1x64xf32> to vector<2x64xf32>
    %253 = arith.mulf %246, %252 : vector<2x64xf32>
    %254 = arith.addf %251, %253 : vector<2x64xf32>
    %cst_44 = arith.constant dense<0.000000e+00> : vector<2xf32>
    %255 = vector.multi_reduction <add>, %254, %cst_44 [1] : vector<2x64xf32> to vector<2xf32>
    %256 = vector.shape_cast %255 : vector<2xf32> to vector<2x1xf32>
    %257 = vector.broadcast %256 : vector<2x1xf32> to vector<2x22xf32>
    %258 = arith.addf %79, %257 : vector<2x22xf32>
    %cst_45 = arith.constant dense<0xFF800000> : vector<2xf32>
    %259 = vector.multi_reduction <maximumf>, %258, %cst_45 [1] : vector<2x22xf32> to vector<2xf32>
    %260 = vector.shape_cast %259 : vector<2xf32> to vector<2x1xf32>
    %261 = vector.broadcast %260 : vector<2x1xf32> to vector<2x22xf32>
    %262 = arith.subf %258, %261 : vector<2x22xf32>
    %263 = math.exp %262 : vector<2x22xf32>
    %cst_46 = arith.constant dense<0.000000e+00> : vector<2xf32>
    %264 = vector.multi_reduction <add>, %263, %cst_46 [1] : vector<2x22xf32> to vector<2xf32>
    %265 = vector.shape_cast %264 : vector<2xf32> to vector<2x1xf32>
    %266 = vector.broadcast %265 : vector<2x1xf32> to vector<2x22xf32>
    %267 = arith.divf %263, %266 : vector<2x22xf32>
    %268 = vector.extract_strided_slice %0 {offsets = [0, 4, 0], sizes = [2, 1, 22], strides = [1, 1, 1]} : vector<2x12x22xf32> to vector<2x1x22xf32>
    %269 = vector.shape_cast %268 : vector<2x1x22xf32> to vector<2x22xf32>
    %270 = arith.mulf %267, %269 : vector<2x22xf32>
    %cst_47 = arith.constant dense<0.000000e+00> : vector<2x256xf32>
    %271 = tpu.matmul %270, %1, %cst_47 {dimension_numbers = #tpu.dot_dimension_numbers<[1], [0], [0], [1], [0, 0, 1, 1], [], []>} : vector<2x22xf32>, vector<22x256xf32>, vector<2x256xf32> -> vector<2x256xf32>
    %cst_48 = arith.constant dense<0.000000e+00> : vector<2x256xf32>
    %272 = tpu.matmul %248, %2, %cst_48 {dimension_numbers = #tpu.dot_dimension_numbers<[1], [0], [0], [1], [0, 0, 1, 1], [], []>} : vector<2x64xf32>, vector<64x256xf32>, vector<2x256xf32> -> vector<2x256xf32>
    %273 = arith.addf %271, %272 : vector<2x256xf32>
    %274 = vector.broadcast %3 : vector<1x256xf32> to vector<2x256xf32>
    %275 = arith.addf %273, %274 : vector<2x256xf32>
    %276 = arith.negf %275 : vector<2x256xf32>
    %277 = math.exp %276 : vector<2x256xf32>
    %cst_49 = arith.constant 1.000000e+00 : f32
    %278 = vector.broadcast %cst_49 : f32 to vector<2x256xf32>
    %279 = arith.addf %278, %277 : vector<2x256xf32>
    %280 = arith.divf %278, %279 : vector<2x256xf32>
    %281 = math.tanh %275 : vector<2x256xf32>
    %282 = vector.extract_strided_slice %280 {offsets = [0, 0], sizes = [2, 64], strides = [1, 1]} : vector<2x256xf32> to vector<2x64xf32>
    %283 = vector.extract_strided_slice %280 {offsets = [0, 64], sizes = [2, 64], strides = [1, 1]} : vector<2x256xf32> to vector<2x64xf32>
    %284 = vector.extract_strided_slice %281 {offsets = [0, 128], sizes = [2, 64], strides = [1, 1]} : vector<2x256xf32> to vector<2x64xf32>
    %285 = vector.extract_strided_slice %280 {offsets = [0, 192], sizes = [2, 64], strides = [1, 1]} : vector<2x256xf32> to vector<2x64xf32>
    %286 = arith.mulf %283, %246 : vector<2x64xf32>
    %287 = arith.mulf %282, %284 : vector<2x64xf32>
    %288 = arith.addf %286, %287 : vector<2x64xf32>
    %289 = math.tanh %288 : vector<2x64xf32>
    %290 = arith.mulf %285, %289 : vector<2x64xf32>
    %c0_50 = arith.constant 0 : index
    %c256 = arith.constant 256 : index
    %291 = vector.load %arg8[%c0_50, %c256] : memref<2x768xf32, #tpu.memory_space<vmem>>, vector<2x64xf32>
    tpu.vector_store %arg8[%c0_50, %c256], %290 {strides = array<i32>} : memref<2x768xf32, #tpu.memory_space<vmem>>, vector<2x64xf32>,
    %292 = vector.broadcast %4 : vector<1x64xf32> to vector<2x64xf32>
    %293 = arith.mulf %290, %292 : vector<2x64xf32>
    %294 = vector.broadcast %5 : vector<1x64xf32> to vector<2x64xf32>
    %295 = arith.mulf %288, %294 : vector<2x64xf32>
    %296 = arith.addf %293, %295 : vector<2x64xf32>
    %cst_51 = arith.constant dense<0.000000e+00> : vector<2xf32>
    %297 = vector.multi_reduction <add>, %296, %cst_51 [1] : vector<2x64xf32> to vector<2xf32>
    %298 = vector.shape_cast %297 : vector<2xf32> to vector<2x1xf32>
    %299 = vector.broadcast %298 : vector<2x1xf32> to vector<2x22xf32>
    %300 = arith.addf %79, %299 : vector<2x22xf32>
    %cst_52 = arith.constant dense<0xFF800000> : vector<2xf32>
    %301 = vector.multi_reduction <maximumf>, %300, %cst_52 [1] : vector<2x22xf32> to vector<2xf32>
    %302 = vector.shape_cast %301 : vector<2xf32> to vector<2x1xf32>
    %303 = vector.broadcast %302 : vector<2x1xf32> to vector<2x22xf32>
    %304 = arith.subf %300, %303 : vector<2x22xf32>
    %305 = math.exp %304 : vector<2x22xf32>
    %cst_53 = arith.constant dense<0.000000e+00> : vector<2xf32>
    %306 = vector.multi_reduction <add>, %305, %cst_53 [1] : vector<2x22xf32> to vector<2xf32>
    %307 = vector.shape_cast %306 : vector<2xf32> to vector<2x1xf32>
    %308 = vector.broadcast %307 : vector<2x1xf32> to vector<2x22xf32>
    %309 = arith.divf %305, %308 : vector<2x22xf32>
    %310 = vector.extract_strided_slice %0 {offsets = [0, 5, 0], sizes = [2, 1, 22], strides = [1, 1, 1]} : vector<2x12x22xf32> to vector<2x1x22xf32>
    %311 = vector.shape_cast %310 : vector<2x1x22xf32> to vector<2x22xf32>
    %312 = arith.mulf %309, %311 : vector<2x22xf32>
    %cst_54 = arith.constant dense<0.000000e+00> : vector<2x256xf32>
    %313 = tpu.matmul %312, %1, %cst_54 {dimension_numbers = #tpu.dot_dimension_numbers<[1], [0], [0], [1], [0, 0, 1, 1], [], []>} : vector<2x22xf32>, vector<22x256xf32>, vector<2x256xf32> -> vector<2x256xf32>
    %cst_55 = arith.constant dense<0.000000e+00> : vector<2x256xf32>
    %314 = tpu.matmul %290, %2, %cst_55 {dimension_numbers = #tpu.dot_dimension_numbers<[1], [0], [0], [1], [0, 0, 1, 1], [], []>} : vector<2x64xf32>, vector<64x256xf32>, vector<2x256xf32> -> vector<2x256xf32>
    %315 = arith.addf %313, %314 : vector<2x256xf32>
    %316 = vector.broadcast %3 : vector<1x256xf32> to vector<2x256xf32>
    %317 = arith.addf %315, %316 : vector<2x256xf32>
    %318 = arith.negf %317 : vector<2x256xf32>
    %319 = math.exp %318 : vector<2x256xf32>
    %cst_56 = arith.constant 1.000000e+00 : f32
    %320 = vector.broadcast %cst_56 : f32 to vector<2x256xf32>
    %321 = arith.addf %320, %319 : vector<2x256xf32>
    %322 = arith.divf %320, %321 : vector<2x256xf32>
    %323 = math.tanh %317 : vector<2x256xf32>
    %324 = vector.extract_strided_slice %322 {offsets = [0, 0], sizes = [2, 64], strides = [1, 1]} : vector<2x256xf32> to vector<2x64xf32>
    %325 = vector.extract_strided_slice %322 {offsets = [0, 64], sizes = [2, 64], strides = [1, 1]} : vector<2x256xf32> to vector<2x64xf32>
    %326 = vector.extract_strided_slice %323 {offsets = [0, 128], sizes = [2, 64], strides = [1, 1]} : vector<2x256xf32> to vector<2x64xf32>
    %327 = vector.extract_strided_slice %322 {offsets = [0, 192], sizes = [2, 64], strides = [1, 1]} : vector<2x256xf32> to vector<2x64xf32>
    %328 = arith.mulf %325, %288 : vector<2x64xf32>
    %329 = arith.mulf %324, %326 : vector<2x64xf32>
    %330 = arith.addf %328, %329 : vector<2x64xf32>
    %331 = math.tanh %330 : vector<2x64xf32>
    %332 = arith.mulf %327, %331 : vector<2x64xf32>
    %c0_57 = arith.constant 0 : index
    %c320 = arith.constant 320 : index
    %333 = vector.load %arg8[%c0_57, %c320] : memref<2x768xf32, #tpu.memory_space<vmem>>, vector<2x64xf32>
    tpu.vector_store %arg8[%c0_57, %c320], %332 {strides = array<i32>} : memref<2x768xf32, #tpu.memory_space<vmem>>, vector<2x64xf32>,
    %334 = vector.broadcast %4 : vector<1x64xf32> to vector<2x64xf32>
    %335 = arith.mulf %332, %334 : vector<2x64xf32>
    %336 = vector.broadcast %5 : vector<1x64xf32> to vector<2x64xf32>
    %337 = arith.mulf %330, %336 : vector<2x64xf32>
    %338 = arith.addf %335, %337 : vector<2x64xf32>
    %cst_58 = arith.constant dense<0.000000e+00> : vector<2xf32>
    %339 = vector.multi_reduction <add>, %338, %cst_58 [1] : vector<2x64xf32> to vector<2xf32>
    %340 = vector.shape_cast %339 : vector<2xf32> to vector<2x1xf32>
    %341 = vector.broadcast %340 : vector<2x1xf32> to vector<2x22xf32>
    %342 = arith.addf %79, %341 : vector<2x22xf32>
    %cst_59 = arith.constant dense<0xFF800000> : vector<2xf32>
    %343 = vector.multi_reduction <maximumf>, %342, %cst_59 [1] : vector<2x22xf32> to vector<2xf32>
    %344 = vector.shape_cast %343 : vector<2xf32> to vector<2x1xf32>
    %345 = vector.broadcast %344 : vector<2x1xf32> to vector<2x22xf32>
    %346 = arith.subf %342, %345 : vector<2x22xf32>
    %347 = math.exp %346 : vector<2x22xf32>
    %cst_60 = arith.constant dense<0.000000e+00> : vector<2xf32>
    %348 = vector.multi_reduction <add>, %347, %cst_60 [1] : vector<2x22xf32> to vector<2xf32>
    %349 = vector.shape_cast %348 : vector<2xf32> to vector<2x1xf32>
    %350 = vector.broadcast %349 : vector<2x1xf32> to vector<2x22xf32>
    %351 = arith.divf %347, %350 : vector<2x22xf32>
    %352 = vector.extract_strided_slice %0 {offsets = [0, 6, 0], sizes = [2, 1, 22], strides = [1, 1, 1]} : vector<2x12x22xf32> to vector<2x1x22xf32>
    %353 = vector.shape_cast %352 : vector<2x1x22xf32> to vector<2x22xf32>
    %354 = arith.mulf %351, %353 : vector<2x22xf32>
    %cst_61 = arith.constant dense<0.000000e+00> : vector<2x256xf32>
    %355 = tpu.matmul %354, %1, %cst_61 {dimension_numbers = #tpu.dot_dimension_numbers<[1], [0], [0], [1], [0, 0, 1, 1], [], []>} : vector<2x22xf32>, vector<22x256xf32>, vector<2x256xf32> -> vector<2x256xf32>
    %cst_62 = arith.constant dense<0.000000e+00> : vector<2x256xf32>
    %356 = tpu.matmul %332, %2, %cst_62 {dimension_numbers = #tpu.dot_dimension_numbers<[1], [0], [0], [1], [0, 0, 1, 1], [], []>} : vector<2x64xf32>, vector<64x256xf32>, vector<2x256xf32> -> vector<2x256xf32>
    %357 = arith.addf %355, %356 : vector<2x256xf32>
    %358 = vector.broadcast %3 : vector<1x256xf32> to vector<2x256xf32>
    %359 = arith.addf %357, %358 : vector<2x256xf32>
    %360 = arith.negf %359 : vector<2x256xf32>
    %361 = math.exp %360 : vector<2x256xf32>
    %cst_63 = arith.constant 1.000000e+00 : f32
    %362 = vector.broadcast %cst_63 : f32 to vector<2x256xf32>
    %363 = arith.addf %362, %361 : vector<2x256xf32>
    %364 = arith.divf %362, %363 : vector<2x256xf32>
    %365 = math.tanh %359 : vector<2x256xf32>
    %366 = vector.extract_strided_slice %364 {offsets = [0, 0], sizes = [2, 64], strides = [1, 1]} : vector<2x256xf32> to vector<2x64xf32>
    %367 = vector.extract_strided_slice %364 {offsets = [0, 64], sizes = [2, 64], strides = [1, 1]} : vector<2x256xf32> to vector<2x64xf32>
    %368 = vector.extract_strided_slice %365 {offsets = [0, 128], sizes = [2, 64], strides = [1, 1]} : vector<2x256xf32> to vector<2x64xf32>
    %369 = vector.extract_strided_slice %364 {offsets = [0, 192], sizes = [2, 64], strides = [1, 1]} : vector<2x256xf32> to vector<2x64xf32>
    %370 = arith.mulf %367, %330 : vector<2x64xf32>
    %371 = arith.mulf %366, %368 : vector<2x64xf32>
    %372 = arith.addf %370, %371 : vector<2x64xf32>
    %373 = math.tanh %372 : vector<2x64xf32>
    %374 = arith.mulf %369, %373 : vector<2x64xf32>
    %c0_64 = arith.constant 0 : index
    %c384 = arith.constant 384 : index
    %375 = vector.load %arg8[%c0_64, %c384] : memref<2x768xf32, #tpu.memory_space<vmem>>, vector<2x64xf32>
    tpu.vector_store %arg8[%c0_64, %c384], %374 {strides = array<i32>} : memref<2x768xf32, #tpu.memory_space<vmem>>, vector<2x64xf32>,
    %376 = vector.broadcast %4 : vector<1x64xf32> to vector<2x64xf32>
    %377 = arith.mulf %374, %376 : vector<2x64xf32>
    %378 = vector.broadcast %5 : vector<1x64xf32> to vector<2x64xf32>
    %379 = arith.mulf %372, %378 : vector<2x64xf32>
    %380 = arith.addf %377, %379 : vector<2x64xf32>
    %cst_65 = arith.constant dense<0.000000e+00> : vector<2xf32>
    %381 = vector.multi_reduction <add>, %380, %cst_65 [1] : vector<2x64xf32> to vector<2xf32>
    %382 = vector.shape_cast %381 : vector<2xf32> to vector<2x1xf32>
    %383 = vector.broadcast %382 : vector<2x1xf32> to vector<2x22xf32>
    %384 = arith.addf %79, %383 : vector<2x22xf32>
    %cst_66 = arith.constant dense<0xFF800000> : vector<2xf32>
    %385 = vector.multi_reduction <maximumf>, %384, %cst_66 [1] : vector<2x22xf32> to vector<2xf32>
    %386 = vector.shape_cast %385 : vector<2xf32> to vector<2x1xf32>
    %387 = vector.broadcast %386 : vector<2x1xf32> to vector<2x22xf32>
    %388 = arith.subf %384, %387 : vector<2x22xf32>
    %389 = math.exp %388 : vector<2x22xf32>
    %cst_67 = arith.constant dense<0.000000e+00> : vector<2xf32>
    %390 = vector.multi_reduction <add>, %389, %cst_67 [1] : vector<2x22xf32> to vector<2xf32>
    %391 = vector.shape_cast %390 : vector<2xf32> to vector<2x1xf32>
    %392 = vector.broadcast %391 : vector<2x1xf32> to vector<2x22xf32>
    %393 = arith.divf %389, %392 : vector<2x22xf32>
    %394 = vector.extract_strided_slice %0 {offsets = [0, 7, 0], sizes = [2, 1, 22], strides = [1, 1, 1]} : vector<2x12x22xf32> to vector<2x1x22xf32>
    %395 = vector.shape_cast %394 : vector<2x1x22xf32> to vector<2x22xf32>
    %396 = arith.mulf %393, %395 : vector<2x22xf32>
    %cst_68 = arith.constant dense<0.000000e+00> : vector<2x256xf32>
    %397 = tpu.matmul %396, %1, %cst_68 {dimension_numbers = #tpu.dot_dimension_numbers<[1], [0], [0], [1], [0, 0, 1, 1], [], []>} : vector<2x22xf32>, vector<22x256xf32>, vector<2x256xf32> -> vector<2x256xf32>
    %cst_69 = arith.constant dense<0.000000e+00> : vector<2x256xf32>
    %398 = tpu.matmul %374, %2, %cst_69 {dimension_numbers = #tpu.dot_dimension_numbers<[1], [0], [0], [1], [0, 0, 1, 1], [], []>} : vector<2x64xf32>, vector<64x256xf32>, vector<2x256xf32> -> vector<2x256xf32>
    %399 = arith.addf %397, %398 : vector<2x256xf32>
    %400 = vector.broadcast %3 : vector<1x256xf32> to vector<2x256xf32>
    %401 = arith.addf %399, %400 : vector<2x256xf32>
    %402 = arith.negf %401 : vector<2x256xf32>
    %403 = math.exp %402 : vector<2x256xf32>
    %cst_70 = arith.constant 1.000000e+00 : f32
    %404 = vector.broadcast %cst_70 : f32 to vector<2x256xf32>
    %405 = arith.addf %404, %403 : vector<2x256xf32>
    %406 = arith.divf %404, %405 : vector<2x256xf32>
    %407 = math.tanh %401 : vector<2x256xf32>
    %408 = vector.extract_strided_slice %406 {offsets = [0, 0], sizes = [2, 64], strides = [1, 1]} : vector<2x256xf32> to vector<2x64xf32>
    %409 = vector.extract_strided_slice %406 {offsets = [0, 64], sizes = [2, 64], strides = [1, 1]} : vector<2x256xf32> to vector<2x64xf32>
    %410 = vector.extract_strided_slice %407 {offsets = [0, 128], sizes = [2, 64], strides = [1, 1]} : vector<2x256xf32> to vector<2x64xf32>
    %411 = vector.extract_strided_slice %406 {offsets = [0, 192], sizes = [2, 64], strides = [1, 1]} : vector<2x256xf32> to vector<2x64xf32>
    %412 = arith.mulf %409, %372 : vector<2x64xf32>
    %413 = arith.mulf %408, %410 : vector<2x64xf32>
    %414 = arith.addf %412, %413 : vector<2x64xf32>
    %415 = math.tanh %414 : vector<2x64xf32>
    %416 = arith.mulf %411, %415 : vector<2x64xf32>
    %c0_71 = arith.constant 0 : index
    %c448 = arith.constant 448 : index
    %417 = vector.load %arg8[%c0_71, %c448] : memref<2x768xf32, #tpu.memory_space<vmem>>, vector<2x64xf32>
    tpu.vector_store %arg8[%c0_71, %c448], %416 {strides = array<i32>} : memref<2x768xf32, #tpu.memory_space<vmem>>, vector<2x64xf32>,
    %418 = vector.broadcast %4 : vector<1x64xf32> to vector<2x64xf32>
    %419 = arith.mulf %416, %418 : vector<2x64xf32>
    %420 = vector.broadcast %5 : vector<1x64xf32> to vector<2x64xf32>
    %421 = arith.mulf %414, %420 : vector<2x64xf32>
    %422 = arith.addf %419, %421 : vector<2x64xf32>
    %cst_72 = arith.constant dense<0.000000e+00> : vector<2xf32>
    %423 = vector.multi_reduction <add>, %422, %cst_72 [1] : vector<2x64xf32> to vector<2xf32>
    %424 = vector.shape_cast %423 : vector<2xf32> to vector<2x1xf32>
    %425 = vector.broadcast %424 : vector<2x1xf32> to vector<2x22xf32>
    %426 = arith.addf %79, %425 : vector<2x22xf32>
    %cst_73 = arith.constant dense<0xFF800000> : vector<2xf32>
    %427 = vector.multi_reduction <maximumf>, %426, %cst_73 [1] : vector<2x22xf32> to vector<2xf32>
    %428 = vector.shape_cast %427 : vector<2xf32> to vector<2x1xf32>
    %429 = vector.broadcast %428 : vector<2x1xf32> to vector<2x22xf32>
    %430 = arith.subf %426, %429 : vector<2x22xf32>
    %431 = math.exp %430 : vector<2x22xf32>
    %cst_74 = arith.constant dense<0.000000e+00> : vector<2xf32>
    %432 = vector.multi_reduction <add>, %431, %cst_74 [1] : vector<2x22xf32> to vector<2xf32>
    %433 = vector.shape_cast %432 : vector<2xf32> to vector<2x1xf32>
    %434 = vector.broadcast %433 : vector<2x1xf32> to vector<2x22xf32>
    %435 = arith.divf %431, %434 : vector<2x22xf32>
    %436 = vector.extract_strided_slice %0 {offsets = [0, 8, 0], sizes = [2, 1, 22], strides = [1, 1, 1]} : vector<2x12x22xf32> to vector<2x1x22xf32>
    %437 = vector.shape_cast %436 : vector<2x1x22xf32> to vector<2x22xf32>
    %438 = arith.mulf %435, %437 : vector<2x22xf32>
    %cst_75 = arith.constant dense<0.000000e+00> : vector<2x256xf32>
    %439 = tpu.matmul %438, %1, %cst_75 {dimension_numbers = #tpu.dot_dimension_numbers<[1], [0], [0], [1], [0, 0, 1, 1], [], []>} : vector<2x22xf32>, vector<22x256xf32>, vector<2x256xf32> -> vector<2x256xf32>
    %cst_76 = arith.constant dense<0.000000e+00> : vector<2x256xf32>
    %440 = tpu.matmul %416, %2, %cst_76 {dimension_numbers = #tpu.dot_dimension_numbers<[1], [0], [0], [1], [0, 0, 1, 1], [], []>} : vector<2x64xf32>, vector<64x256xf32>, vector<2x256xf32> -> vector<2x256xf32>
    %441 = arith.addf %439, %440 : vector<2x256xf32>
    %442 = vector.broadcast %3 : vector<1x256xf32> to vector<2x256xf32>
    %443 = arith.addf %441, %442 : vector<2x256xf32>
    %444 = arith.negf %443 : vector<2x256xf32>
    %445 = math.exp %444 : vector<2x256xf32>
    %cst_77 = arith.constant 1.000000e+00 : f32
    %446 = vector.broadcast %cst_77 : f32 to vector<2x256xf32>
    %447 = arith.addf %446, %445 : vector<2x256xf32>
    %448 = arith.divf %446, %447 : vector<2x256xf32>
    %449 = math.tanh %443 : vector<2x256xf32>
    %450 = vector.extract_strided_slice %448 {offsets = [0, 0], sizes = [2, 64], strides = [1, 1]} : vector<2x256xf32> to vector<2x64xf32>
    %451 = vector.extract_strided_slice %448 {offsets = [0, 64], sizes = [2, 64], strides = [1, 1]} : vector<2x256xf32> to vector<2x64xf32>
    %452 = vector.extract_strided_slice %449 {offsets = [0, 128], sizes = [2, 64], strides = [1, 1]} : vector<2x256xf32> to vector<2x64xf32>
    %453 = vector.extract_strided_slice %448 {offsets = [0, 192], sizes = [2, 64], strides = [1, 1]} : vector<2x256xf32> to vector<2x64xf32>
    %454 = arith.mulf %451, %414 : vector<2x64xf32>
    %455 = arith.mulf %450, %452 : vector<2x64xf32>
    %456 = arith.addf %454, %455 : vector<2x64xf32>
    %457 = math.tanh %456 : vector<2x64xf32>
    %458 = arith.mulf %453, %457 : vector<2x64xf32>
    %c0_78 = arith.constant 0 : index
    %c512 = arith.constant 512 : index
    %459 = vector.load %arg8[%c0_78, %c512] : memref<2x768xf32, #tpu.memory_space<vmem>>, vector<2x64xf32>
    tpu.vector_store %arg8[%c0_78, %c512], %458 {strides = array<i32>} : memref<2x768xf32, #tpu.memory_space<vmem>>, vector<2x64xf32>,
    %460 = vector.broadcast %4 : vector<1x64xf32> to vector<2x64xf32>
    %461 = arith.mulf %458, %460 : vector<2x64xf32>
    %462 = vector.broadcast %5 : vector<1x64xf32> to vector<2x64xf32>
    %463 = arith.mulf %456, %462 : vector<2x64xf32>
    %464 = arith.addf %461, %463 : vector<2x64xf32>
    %cst_79 = arith.constant dense<0.000000e+00> : vector<2xf32>
    %465 = vector.multi_reduction <add>, %464, %cst_79 [1] : vector<2x64xf32> to vector<2xf32>
    %466 = vector.shape_cast %465 : vector<2xf32> to vector<2x1xf32>
    %467 = vector.broadcast %466 : vector<2x1xf32> to vector<2x22xf32>
    %468 = arith.addf %79, %467 : vector<2x22xf32>
    %cst_80 = arith.constant dense<0xFF800000> : vector<2xf32>
    %469 = vector.multi_reduction <maximumf>, %468, %cst_80 [1] : vector<2x22xf32> to vector<2xf32>
    %470 = vector.shape_cast %469 : vector<2xf32> to vector<2x1xf32>
    %471 = vector.broadcast %470 : vector<2x1xf32> to vector<2x22xf32>
    %472 = arith.subf %468, %471 : vector<2x22xf32>
    %473 = math.exp %472 : vector<2x22xf32>
    %cst_81 = arith.constant dense<0.000000e+00> : vector<2xf32>
    %474 = vector.multi_reduction <add>, %473, %cst_81 [1] : vector<2x22xf32> to vector<2xf32>
    %475 = vector.shape_cast %474 : vector<2xf32> to vector<2x1xf32>
    %476 = vector.broadcast %475 : vector<2x1xf32> to vector<2x22xf32>
    %477 = arith.divf %473, %476 : vector<2x22xf32>
    %478 = vector.extract_strided_slice %0 {offsets = [0, 9, 0], sizes = [2, 1, 22], strides = [1, 1, 1]} : vector<2x12x22xf32> to vector<2x1x22xf32>
    %479 = vector.shape_cast %478 : vector<2x1x22xf32> to vector<2x22xf32>
    %480 = arith.mulf %477, %479 : vector<2x22xf32>
    %cst_82 = arith.constant dense<0.000000e+00> : vector<2x256xf32>
    %481 = tpu.matmul %480, %1, %cst_82 {dimension_numbers = #tpu.dot_dimension_numbers<[1], [0], [0], [1], [0, 0, 1, 1], [], []>} : vector<2x22xf32>, vector<22x256xf32>, vector<2x256xf32> -> vector<2x256xf32>
    %cst_83 = arith.constant dense<0.000000e+00> : vector<2x256xf32>
    %482 = tpu.matmul %458, %2, %cst_83 {dimension_numbers = #tpu.dot_dimension_numbers<[1], [0], [0], [1], [0, 0, 1, 1], [], []>} : vector<2x64xf32>, vector<64x256xf32>, vector<2x256xf32> -> vector<2x256xf32>
    %483 = arith.addf %481, %482 : vector<2x256xf32>
    %484 = vector.broadcast %3 : vector<1x256xf32> to vector<2x256xf32>
    %485 = arith.addf %483, %484 : vector<2x256xf32>
    %486 = arith.negf %485 : vector<2x256xf32>
    %487 = math.exp %486 : vector<2x256xf32>
    %cst_84 = arith.constant 1.000000e+00 : f32
    %488 = vector.broadcast %cst_84 : f32 to vector<2x256xf32>
    %489 = arith.addf %488, %487 : vector<2x256xf32>
    %490 = arith.divf %488, %489 : vector<2x256xf32>
    %491 = math.tanh %485 : vector<2x256xf32>
    %492 = vector.extract_strided_slice %490 {offsets = [0, 0], sizes = [2, 64], strides = [1, 1]} : vector<2x256xf32> to vector<2x64xf32>
    %493 = vector.extract_strided_slice %490 {offsets = [0, 64], sizes = [2, 64], strides = [1, 1]} : vector<2x256xf32> to vector<2x64xf32>
    %494 = vector.extract_strided_slice %491 {offsets = [0, 128], sizes = [2, 64], strides = [1, 1]} : vector<2x256xf32> to vector<2x64xf32>
    %495 = vector.extract_strided_slice %490 {offsets = [0, 192], sizes = [2, 64], strides = [1, 1]} : vector<2x256xf32> to vector<2x64xf32>
    %496 = arith.mulf %493, %456 : vector<2x64xf32>
    %497 = arith.mulf %492, %494 : vector<2x64xf32>
    %498 = arith.addf %496, %497 : vector<2x64xf32>
    %499 = math.tanh %498 : vector<2x64xf32>
    %500 = arith.mulf %495, %499 : vector<2x64xf32>
    %c0_85 = arith.constant 0 : index
    %c576 = arith.constant 576 : index
    %501 = vector.load %arg8[%c0_85, %c576] : memref<2x768xf32, #tpu.memory_space<vmem>>, vector<2x64xf32>
    tpu.vector_store %arg8[%c0_85, %c576], %500 {strides = array<i32>} : memref<2x768xf32, #tpu.memory_space<vmem>>, vector<2x64xf32>,
    %502 = vector.broadcast %4 : vector<1x64xf32> to vector<2x64xf32>
    %503 = arith.mulf %500, %502 : vector<2x64xf32>
    %504 = vector.broadcast %5 : vector<1x64xf32> to vector<2x64xf32>
    %505 = arith.mulf %498, %504 : vector<2x64xf32>
    %506 = arith.addf %503, %505 : vector<2x64xf32>
    %cst_86 = arith.constant dense<0.000000e+00> : vector<2xf32>
    %507 = vector.multi_reduction <add>, %506, %cst_86 [1] : vector<2x64xf32> to vector<2xf32>
    %508 = vector.shape_cast %507 : vector<2xf32> to vector<2x1xf32>
    %509 = vector.broadcast %508 : vector<2x1xf32> to vector<2x22xf32>
    %510 = arith.addf %79, %509 : vector<2x22xf32>
    %cst_87 = arith.constant dense<0xFF800000> : vector<2xf32>
    %511 = vector.multi_reduction <maximumf>, %510, %cst_87 [1] : vector<2x22xf32> to vector<2xf32>
    %512 = vector.shape_cast %511 : vector<2xf32> to vector<2x1xf32>
    %513 = vector.broadcast %512 : vector<2x1xf32> to vector<2x22xf32>
    %514 = arith.subf %510, %513 : vector<2x22xf32>
    %515 = math.exp %514 : vector<2x22xf32>
    %cst_88 = arith.constant dense<0.000000e+00> : vector<2xf32>
    %516 = vector.multi_reduction <add>, %515, %cst_88 [1] : vector<2x22xf32> to vector<2xf32>
    %517 = vector.shape_cast %516 : vector<2xf32> to vector<2x1xf32>
    %518 = vector.broadcast %517 : vector<2x1xf32> to vector<2x22xf32>
    %519 = arith.divf %515, %518 : vector<2x22xf32>
    %520 = vector.extract_strided_slice %0 {offsets = [0, 10, 0], sizes = [2, 1, 22], strides = [1, 1, 1]} : vector<2x12x22xf32> to vector<2x1x22xf32>
    %521 = vector.shape_cast %520 : vector<2x1x22xf32> to vector<2x22xf32>
    %522 = arith.mulf %519, %521 : vector<2x22xf32>
    %cst_89 = arith.constant dense<0.000000e+00> : vector<2x256xf32>
    %523 = tpu.matmul %522, %1, %cst_89 {dimension_numbers = #tpu.dot_dimension_numbers<[1], [0], [0], [1], [0, 0, 1, 1], [], []>} : vector<2x22xf32>, vector<22x256xf32>, vector<2x256xf32> -> vector<2x256xf32>
    %cst_90 = arith.constant dense<0.000000e+00> : vector<2x256xf32>
    %524 = tpu.matmul %500, %2, %cst_90 {dimension_numbers = #tpu.dot_dimension_numbers<[1], [0], [0], [1], [0, 0, 1, 1], [], []>} : vector<2x64xf32>, vector<64x256xf32>, vector<2x256xf32> -> vector<2x256xf32>
    %525 = arith.addf %523, %524 : vector<2x256xf32>
    %526 = vector.broadcast %3 : vector<1x256xf32> to vector<2x256xf32>
    %527 = arith.addf %525, %526 : vector<2x256xf32>
    %528 = arith.negf %527 : vector<2x256xf32>
    %529 = math.exp %528 : vector<2x256xf32>
    %cst_91 = arith.constant 1.000000e+00 : f32
    %530 = vector.broadcast %cst_91 : f32 to vector<2x256xf32>
    %531 = arith.addf %530, %529 : vector<2x256xf32>
    %532 = arith.divf %530, %531 : vector<2x256xf32>
    %533 = math.tanh %527 : vector<2x256xf32>
    %534 = vector.extract_strided_slice %532 {offsets = [0, 0], sizes = [2, 64], strides = [1, 1]} : vector<2x256xf32> to vector<2x64xf32>
    %535 = vector.extract_strided_slice %532 {offsets = [0, 64], sizes = [2, 64], strides = [1, 1]} : vector<2x256xf32> to vector<2x64xf32>
    %536 = vector.extract_strided_slice %533 {offsets = [0, 128], sizes = [2, 64], strides = [1, 1]} : vector<2x256xf32> to vector<2x64xf32>
    %537 = vector.extract_strided_slice %532 {offsets = [0, 192], sizes = [2, 64], strides = [1, 1]} : vector<2x256xf32> to vector<2x64xf32>
    %538 = arith.mulf %535, %498 : vector<2x64xf32>
    %539 = arith.mulf %534, %536 : vector<2x64xf32>
    %540 = arith.addf %538, %539 : vector<2x64xf32>
    %541 = math.tanh %540 : vector<2x64xf32>
    %542 = arith.mulf %537, %541 : vector<2x64xf32>
    %c0_92 = arith.constant 0 : index
    %c640 = arith.constant 640 : index
    %543 = vector.load %arg8[%c0_92, %c640] : memref<2x768xf32, #tpu.memory_space<vmem>>, vector<2x64xf32>
    tpu.vector_store %arg8[%c0_92, %c640], %542 {strides = array<i32>} : memref<2x768xf32, #tpu.memory_space<vmem>>, vector<2x64xf32>,
    %544 = vector.broadcast %4 : vector<1x64xf32> to vector<2x64xf32>
    %545 = arith.mulf %542, %544 : vector<2x64xf32>
    %546 = vector.broadcast %5 : vector<1x64xf32> to vector<2x64xf32>
    %547 = arith.mulf %540, %546 : vector<2x64xf32>
    %548 = arith.addf %545, %547 : vector<2x64xf32>
    %cst_93 = arith.constant dense<0.000000e+00> : vector<2xf32>
    %549 = vector.multi_reduction <add>, %548, %cst_93 [1] : vector<2x64xf32> to vector<2xf32>
    %550 = vector.shape_cast %549 : vector<2xf32> to vector<2x1xf32>
    %551 = vector.broadcast %550 : vector<2x1xf32> to vector<2x22xf32>
    %552 = arith.addf %79, %551 : vector<2x22xf32>
    %cst_94 = arith.constant dense<0xFF800000> : vector<2xf32>
    %553 = vector.multi_reduction <maximumf>, %552, %cst_94 [1] : vector<2x22xf32> to vector<2xf32>
    %554 = vector.shape_cast %553 : vector<2xf32> to vector<2x1xf32>
    %555 = vector.broadcast %554 : vector<2x1xf32> to vector<2x22xf32>
    %556 = arith.subf %552, %555 : vector<2x22xf32>
    %557 = math.exp %556 : vector<2x22xf32>
    %cst_95 = arith.constant dense<0.000000e+00> : vector<2xf32>
    %558 = vector.multi_reduction <add>, %557, %cst_95 [1] : vector<2x22xf32> to vector<2xf32>
    %559 = vector.shape_cast %558 : vector<2xf32> to vector<2x1xf32>
    %560 = vector.broadcast %559 : vector<2x1xf32> to vector<2x22xf32>
    %561 = arith.divf %557, %560 : vector<2x22xf32>
    %562 = vector.extract_strided_slice %0 {offsets = [0, 11, 0], sizes = [2, 1, 22], strides = [1, 1, 1]} : vector<2x12x22xf32> to vector<2x1x22xf32>
    %563 = vector.shape_cast %562 : vector<2x1x22xf32> to vector<2x22xf32>
    %564 = arith.mulf %561, %563 : vector<2x22xf32>
    %cst_96 = arith.constant dense<0.000000e+00> : vector<2x256xf32>
    %565 = tpu.matmul %564, %1, %cst_96 {dimension_numbers = #tpu.dot_dimension_numbers<[1], [0], [0], [1], [0, 0, 1, 1], [], []>} : vector<2x22xf32>, vector<22x256xf32>, vector<2x256xf32> -> vector<2x256xf32>
    %cst_97 = arith.constant dense<0.000000e+00> : vector<2x256xf32>
    %566 = tpu.matmul %542, %2, %cst_97 {dimension_numbers = #tpu.dot_dimension_numbers<[1], [0], [0], [1], [0, 0, 1, 1], [], []>} : vector<2x64xf32>, vector<64x256xf32>, vector<2x256xf32> -> vector<2x256xf32>
    %567 = arith.addf %565, %566 : vector<2x256xf32>
    %568 = vector.broadcast %3 : vector<1x256xf32> to vector<2x256xf32>
    %569 = arith.addf %567, %568 : vector<2x256xf32>
    %570 = arith.negf %569 : vector<2x256xf32>
    %571 = math.exp %570 : vector<2x256xf32>
    %cst_98 = arith.constant 1.000000e+00 : f32
    %572 = vector.broadcast %cst_98 : f32 to vector<2x256xf32>
    %573 = arith.addf %572, %571 : vector<2x256xf32>
    %574 = arith.divf %572, %573 : vector<2x256xf32>
    %575 = math.tanh %569 : vector<2x256xf32>
    %576 = vector.extract_strided_slice %574 {offsets = [0, 0], sizes = [2, 64], strides = [1, 1]} : vector<2x256xf32> to vector<2x64xf32>
    %577 = vector.extract_strided_slice %574 {offsets = [0, 64], sizes = [2, 64], strides = [1, 1]} : vector<2x256xf32> to vector<2x64xf32>
    %578 = vector.extract_strided_slice %575 {offsets = [0, 128], sizes = [2, 64], strides = [1, 1]} : vector<2x256xf32> to vector<2x64xf32>
    %579 = vector.extract_strided_slice %574 {offsets = [0, 192], sizes = [2, 64], strides = [1, 1]} : vector<2x256xf32> to vector<2x64xf32>
    %580 = arith.mulf %577, %540 : vector<2x64xf32>
    %581 = arith.mulf %576, %578 : vector<2x64xf32>
    %582 = arith.addf %580, %581 : vector<2x64xf32>
    %583 = math.tanh %582 : vector<2x64xf32>
    %584 = arith.mulf %579, %583 : vector<2x64xf32>
    %c0_99 = arith.constant 0 : index
    %c704 = arith.constant 704 : index
    %585 = vector.load %arg8[%c0_99, %c704] : memref<2x768xf32, #tpu.memory_space<vmem>>, vector<2x64xf32>
    tpu.vector_store %arg8[%c0_99, %c704], %584 {strides = array<i32>} : memref<2x768xf32, #tpu.memory_space<vmem>>, vector<2x64xf32>,
    return
  }
}

</mosaic_0001>

<bundles_post_ra>
// kernel: attn_encoder_forward.1
= control target key start
LH: loop header
LB: loop body
LE: loop exit
PB: predicated region body
PF: predicated region fallthrough
CT: control target
= control target key end

     0   :  { %14 = vsyncpa [#allocation4], 0  ;;  %s4551_s0 = inlined_call_operand.vmem [shape: f32[2,12,22], index: 0, kind: input, shape index: {}]   ;;  %s4552_s1 = inlined_call_operand.vmem [shape: f32[22,256], index: 1, kind: input, shape index: {}]   ;;  %s4553_s2 = inlined_call_operand.hbm [shape: f32[64,256], index: 2, kind: input, shape index: {}]   ;;  %s4554_s3 = inlined_call_operand.vmem [shape: f32[1,256], index: 3, kind: input, shape index: {}]   ;;  %s4555_s4 = inlined_call_operand.vmem [shape: f32[1,64], index: 4, kind: input, shape index: {}]   ;;  %s4556_s5 = inlined_call_operand.vmem [shape: f32[1,64], index: 5, kind: input, shape index: {}]   ;;  %s4557_s6 = inlined_call_operand.vmem [shape: f32[12], index: 6, kind: input, shape index: {}]   ;;  %s4558_s7 = inlined_call_operand.<no memory space> [shape: f32[1], index: 7, kind: input, shape index: {}]   ;;  %s4559_s8 = inlined_call_operand.vmem [shape: f32[2,768], index: 8, kind: output, shape index: {}]  }
   0x1   :  { %15 = vsyncpa [#allocation5], 0  ;;  %s3761_s27 = smov [#allocation3]   ;;  %s44_s9 = sshll.u32 %s4557_s6, 4  ;;  %s45_s9 = int_to_ptr.vmem [resolvable:$true] %s44_s9 }
   0x2   :  { %s25_s28 = sshll.u32 %s3761_s27, 4  ;;  %s3723_s12 = scalar_lea.hbm %s4553_s2, 2048  ;;  %s26_s28 = int_to_ptr.vmem [resolvable:$true] %s25_s28 }
   0x3   :  { %p3724_p0 = scmp.ne.s32.totalorder %s4553_s2, %s3723_s12  ;;  %p3727_p1 = scmp.lt.u32.totalorder %s3723_s12, %s4553_s2 }
   0x5   :  { %p3729_p2 = pnand %p3727_p1, %p3724_p0 }
   0x7   :  { %3732 = shalt.err (!%p3729_p2)
}
   0x8   :  { %s3733_s17 = scalar_lea.vmem %s26_s28, 2048  ;;  %p3738_p4 = scmp.lt.s32.totalorder %s26_s28, %s26_s28 }
   0x9   :  { %p3734_p3 = scmp.ne.s32.totalorder %s26_s28, %s3733_s17  ;;  %p3739_p5 = scmp.lt.s32.totalorder %s3733_s17, %s3733_s17 }
   0xb   :  { %p3740_p6 = por %p3739_p5, %p3738_p4 }
   0xd   :  { %p3741_p7 = pnand %p3740_p6, %p3734_p3 }
   0xf   :  { %3744 = shalt.err (!%p3741_p7)
}
  0x10   :  { %s3762_s6 = smov 256   ;;  %s3763_s18 = smov 16  }
  0x11   :  { %31 = dma.hbm_to_vmem [thread:$0]  %s4553_s2, 2048, %s26_s28, [#allocation4], %s3762_s6, %s3762_s6, %s3763_s18  }
  0x12   :  { %s3745_s21 = scalar_lea.vmem %s45_s9, 16  ;;  %p3750_p9 = scmp.lt.s32.totalorder %s45_s9, %s45_s9 }
  0x13   :  { %p3746_p8 = scmp.ne.s32.totalorder %s45_s9, %s3745_s21  ;;  %p3751_p10 = scmp.lt.s32.totalorder %s3745_s21, %s3745_s21 }
  0x15   :  { %p3752_p11 = por %p3751_p10, %p3750_p9 }
  0x17   :  { %p3753_p12 = pnand %p3752_p11, %p3746_p8 }
  0x19   :  { %3756 = shalt.err (!%p3753_p12)
}
  0x1a   :  { %s3764_s22 = smov [#allocation6]  }
  0x1b   :  { %47 = dma.vmem_to_smem %s45_s9, 16, %s3764_s22, [#allocation5]  }
  0x1c   :  { %3757 = dma.done.wait [#allocation4], 2048  }
  0x1d   :  { %3758 = vsyncadd [#allocation4], 4294965248 }
  0x1e   :  { %3759 = dma.done.wait [#allocation5], 16  }
  0x1f   :  { %3760 = vsyncadd [#allocation5], 4294967280 }
  0x20   :  { %56 = sfence }
  0x21   :  { %v3831_v0 = vld [vmem:[%s4555_s4] ss:$0 sm:$0xff]  ;;  %vm235_vm0 = vcmask 523264   ;;  %s88_s26 = sld [smem:[#allocation6]]  ;;  %s3122_s27 = sld [smem:[#allocation6 + $0x1]]  ;;  %v3844_v8 = vld [vmem:[%s4551_s0 + $0x10] sm:$0xff]  ;;  %v87_v12 = vstv %s4558_s7 }
  0x22   :  { %v3836_v1 = vld [vmem:[%s4556_s5] ss:$0 sm:$0xff]  ;;  %v226_v2 = vmul.f32 0.0, %v3831_v0  ;;  %s3123_s28 = sld [smem:[#allocation6 + $0x2]]  ;;  %s3124_s4 = sld [smem:[#allocation6 + $0x3]]  ;;  %vm244_vm1 = vcmask 1041409  }
  0x23   :  { %v233_v3 = vmul.f32 0.0, %v3836_v1  ;;  %v3849_v9 = vld [vmem:[%s4551_s0] sm:$0xff]  ;;  %s3125_s12 = sld [smem:[#allocation6 + $0x4]]  ;;  %s3126_s13 = sld [smem:[#allocation6 + $0x5]]  ;;  %v60_v61 = vld [vmem:[%s4551_s0 + $0x18] sm:$0xf] }
  0x24   :  { %s3127_s7 = sld [smem:[#allocation6 + $0x6]]  ;;  %s3128_s14 = sld [smem:[#allocation6 + $0x7]]  ;;  %vm247_vm2 = vcmask 173056   ;;  %vm360_vm3 = vcmask 1045504   ;;  %vm357_vm4 = vcmask 179200   ;;  %vm484_vm5 = vcmask 517120  }
  0x25   :  { %v234_v4 = vadd.f32 %v233_v3, %v226_v2  ;;  %s3129_s15 = sld [smem:[#allocation6 + $0x8]]  ;;  %s3130_s16 = sld [smem:[#allocation6 + $0x9]]  ;;  %v58_v2 = vld [vmem:[%s4551_s0 + $0x8] sm:$0xf]  ;;  %vm726_vm6 = vcmask 1041920  }
  0x26   :  { %s3131_s17 = sld [smem:[#allocation6 + $0xa]]  ;;  %s3132_s6 = sld [smem:[#allocation6 + $0xb]] }
  0x27   :  { %v236_v5 = vsel %vm235_vm0, %v234_v4, 0.0  ;;  %v89_v6 = vstv %s88_s26  ;;  %v95_v7 = vstv %s3122_s27  ;;  %s3766_s9 = smov 64  }
  0x28   :  { %237 = vadd.xlane.f32.xlu0 %v236_v5  ;;  %v91_v10 = vmul.f32 %v89_v6, %v3844_v8  ;;  %v97_v11 = vmul.f32 %v95_v7, %v3844_v8  ;;  %v107_v13 = vstv %s3123_s28  ;;  %v90_v14 = vmul.f32 %v89_v6, %v3849_v9 }
  0x29   :  { %v96_v15 = vmul.f32 %v95_v7, %v3849_v9  ;;  %v109_v18 = vmul.f32 %v107_v13, %v3844_v8  ;;  %v119_v19 = vstv %s3124_s4  ;;  %v108_v22 = vmul.f32 %v107_v13, %v3849_v9 }
  0x2a   :  { %v93_v16 = vadd.f32 %v91_v10, %v87_v12  ;;  %v101_v17 = vrot.slane %v97_v11, 1  ;;  %v92_v20 = vadd.f32 %v90_v14, %v87_v12  ;;  %v121_v25 = vmul.f32 %v119_v19, %v3844_v8 }
  0x2b   :  { %v100_v21 = vrot.slane %v96_v15, 1  ;;  %v113_v24 = vrot.slane %v109_v18, 2  ;;  %v131_v26 = vstv %s3125_s12  ;;  %v112_v28 = vrot.slane %v108_v22, 2 }
  0x2c   :  { %v105_v23 = vadd.f32 %v101_v17, %v93_v16  ;;  %v120_v29 = vmul.f32 %v119_v19, %v3849_v9  ;;  %v125_v31 = vrot.slane %v121_v25, 3  ;;  %v133_v32 = vmul.f32 %v131_v26, %v3844_v8 }
  0x2d   :  { %v104_v27 = vadd.f32 %v100_v21, %v92_v20  ;;  %v143_v33 = vstv %s3126_s13  ;;  %v132_v36 = vmul.f32 %v131_v26, %v3849_v9  ;;  %v155_v40 = vstv %s3127_s7 }
  0x2e   :  { %v117_v30 = vadd.f32 %v113_v24, %v105_v23  ;;  %v124_v35 = vrot.slane %v120_v29, 3  ;;  %v137_v38 = vrot.slane %v133_v32, 4  ;;  %v145_v39 = vmul.f32 %v143_v33, %v3844_v8 }
  0x2f   :  { %v116_v34 = vadd.f32 %v112_v28, %v104_v27  ;;  %v136_v42 = vrot.slane %v132_v36, 4  ;;  %v144_v43 = vmul.f32 %v143_v33, %v3849_v9  ;;  %v157_v46 = vmul.f32 %v155_v40, %v3844_v8 }
  0x30   :  { %v129_v37 = vadd.f32 %v125_v31, %v117_v30  ;;  %v149_v45 = vrot.slane %v145_v39, 5  ;;  %v167_v47 = vstv %s3128_s14  ;;  %v156_v50 = vmul.f32 %v155_v40, %v3849_v9  ;;  %v67_v39 = vld [vmem:[#allocation3] sm:$0xff] }
  0x31   :  { %v128_v41 = vadd.f32 %v124_v35, %v116_v34  ;;  %v148_v49 = vrot.slane %v144_v43, 5  ;;  %v161_v52 = vrot.slane %v157_v46, 6  ;;  %v169_v53 = vmul.f32 %v167_v47, %v3844_v8  ;;  %v74_v43 = vld [vmem:[#allocation3 + $0x38] sm:$0xff] }
  0x32   :  { %v141_v44 = vadd.f32 %v137_v38, %v129_v37  ;;  %v160_v55 = vrot.slane %v156_v50, 6  ;;  %v168_v56 = vmul.f32 %v167_v47, %v3849_v9  ;;  %v179_v59 = vstv %s3129_s15  ;;  %v68_v37 = vld [vmem:[#allocation3 + $0x8] sm:$0xff]  ;;  %v70_v38 = vld [vmem:[#allocation3 + $0x18] sm:$0xff] }
  0x33   :  { %v140_v48 = vadd.f32 %v136_v42, %v128_v41  ;;  %v173_v58 = vrot.slane %v169_v53, 7  ;;  %v185_v60 = vstv %s3130_s16  ;;  %v181_v4 = vmul.f32 %v179_v59, %v60_v61  ;;  %v69_v41 = vld [vmem:[#allocation3 + $0x10] sm:$0xff]  ;;  %v72_v42 = vld [vmem:[#allocation3 + $0x28] sm:$0xff] }
  0x34   :  { %v153_v51 = vadd.f32 %v149_v45, %v141_v44  ;;  %v172_v63 = vrot.slane %v168_v56, 7  ;;  %v187_v5 = vmul.f32 %v185_v60, %v60_v61  ;;  %v197_v6 = vstv %s3131_s17 }
  0x35   :  { %v152_v54 = vadd.f32 %v148_v49, %v140_v48  ;;  %v180_v10 = vmul.f32 %v179_v59, %v58_v2  ;;  %v186_v11 = vmul.f32 %v185_v60, %v58_v2  ;;  %v199_v14 = vmul.f32 %v197_v6, %v60_v61  ;;  %v76_v60 = vld [vmem:[#allocation3 + $0x48] sm:$0xff] }
  0x36   :  { %v165_v57 = vadd.f32 %v161_v52, %v153_v51  ;;  %v191_v13 = vrot.slane %v187_v5, 1  ;;  %v209_v15 = vstv %s3132_s6  ;;  %v198_v18 = vmul.f32 %v197_v6, %v58_v2  ;;  %v82_v5 = vld [vmem:[#allocation3 + $0x78] sm:$0xff]  ;;  %v79_v6 = vld [vmem:[#allocation3 + $0x60] sm:$0xff] }
  0x37   :  { %v164_v62 = vadd.f32 %v160_v55, %v152_v54  ;;  %v190_v17 = vrot.slane %v186_v11, 1  ;;  %v203_v20 = vrot.slane %v199_v14, 2  ;;  %v211_v21 = vmul.f32 %v209_v15, %v60_v61  ;;  %v78_v61 = vld [vmem:[#allocation3 + $0x58] sm:$0xff] }
  0x38   :  { %v177_v3 = vadd.f32 %v173_v58, %v165_v57  ;;  %v202_v23 = vrot.slane %v198_v18, 2  ;;  %v210_v24 = vmul.f32 %v209_v15, %v58_v2  ;;  %v3884_v40 = vpack.c.bf16 %v70_v38, %v68_v37  ;;  %v71_v57 = vld [vmem:[#allocation3 + $0x20] sm:$0xff]  ;;  %v73_v58 = vld [vmem:[#allocation3 + $0x30] sm:$0xff] }
  0x39   :  { %v176_v7 = vadd.f32 %v172_v63, %v164_v62  ;;  %v215_v26 = vrot.slane %v211_v21, 3  ;;  %v3886_v44 = vpack.c.bf16 %v69_v41, %v67_v39  ;;  %v3888_v45 = vpack.c.bf16 %v74_v43, %v72_v42  ;;  %v75_v63 = vld [vmem:[#allocation3 + $0x40] sm:$0xff]  ;;  %v77_v2 = vld [vmem:[#allocation3 + $0x50] sm:$0xff] }
  0x3a   :  { %v183_v12 = vadd.f32 %v181_v4, %v177_v3  ;;  %v214_v28 = vrot.slane %v210_v24, 3  ;;  %3207 = vmatprep.subr.bf16.mxu0 %v3884_v40  ;;  %3227 = vmatprep.subr.bf16.mxu1 %v3884_v40  ;;  %v3898_v59 = vpack.c.bf16 %v73_v58, %v71_v57  ;;  %v3902_v62 = vpack.c.bf16 %v78_v61, %v76_v60  ;;  %v80_v3 = vld [vmem:[#allocation3 + $0x68] sm:$0xff] }
  0x3b   :  { %v182_v16 = vadd.f32 %v180_v10, %v176_v7  ;;  %3209 = vmatpush1.bf16.msra.mxu0 %v3886_v44  ;;  %3229 = vmatpush1.bf16.msra.mxu1 %v3886_v44  ;;  %v3904_v4 = vpack.c.bf16 %v77_v2, %v75_v63  ;;  %v81_v7 = vld [vmem:[#allocation3 + $0x70] sm:$0xff]  ;;  %v3765_v10 = vmov 0.0   ;;  %v3909_v11 = vpack.c.bf16 %v82_v5, %v80_v3 }
  0x3c   :  { %v195_v19 = vadd.f32 %v191_v13, %v183_v12  ;;  %3211 = vmatprep.subr.bf16.mxu0 %v3888_v45  ;;  %3231 = vmatprep.subr.bf16.mxu1 %v3888_v45  ;;  %v62_v12 = vld [vmem:[%s4552_s1 + $0x8] sm:$0xff]  ;;  %v64_v13 = vld [vmem:[%s4552_s1 + $0x18] sm:$0xff]  ;;  %v3919_v14 = vpack.c.bf16 %v81_v7, %v79_v6 }
  0x3d   :  { %v194_v22 = vadd.f32 %v190_v17, %v182_v16  ;;  %346 = vmatprep.mubr.f32.mxu0 %v3765_v10  ;;  %618 = vmatprep.mubr.f32.mxu1 %v3765_v10  ;;  %v3923_v15 = vpack.c.bf16 %v64_v13, %v62_v12  ;;  %v61_v16 = vld [vmem:[%s4552_s1] sm:$0xff]  ;;  %v63_v17 = vld [vmem:[%s4552_s1 + $0x10] sm:$0xff] }
  0x3e   :  { %v207_v25 = vadd.f32 %v203_v20, %v195_v19  ;;  %v3933_v18 = vpack.c.bf16 %v63_v17, %v61_v16  ;;  %v3941_v19 = vld [vmem:[%s4552_s1 + $0x28] sm:$0x3f]  ;;  %v3951_v20 = vld [vmem:[%s4552_s1 + $0x20] sm:$0x3f] }
  0x3f   :  { %v206_v27 = vadd.f32 %v202_v23, %v194_v22  ;;  %3213 = vmatpush1.bf16.msra.mxu0 %v3898_v59  ;;  %3233 = vmatpush1.bf16.msra.mxu1 %v3898_v59 }
  0x40   :  { %v3876_v29 = vadd.f32 %v215_v26, %v207_v25  ;;  %3215 = vmatprep.subr.bf16.mxu0 %v3902_v62  ;;  %3235 = vmatprep.subr.bf16.mxu1 %v3902_v62 }
  0x41   :  { %v3878_v30 = vadd.f32 %v214_v28, %v206_v27 }
  0x43   :  { %3217 = vmatpush1.bf16.msra.mxu0 %v3904_v4  ;;  %3237 = vmatpush1.bf16.msra.mxu1 %v3904_v4 }
  0x44   :  { %3219 = vmatprep.subr.bf16.mxu0 %v3909_v11  ;;  %3239 = vmatprep.subr.bf16.mxu1 %v3909_v11 }
  0x47   :  { %3221 = vmatpush1.bf16.msra.mxu0 %v3919_v14  ;;  %3241 = vmatpush1.bf16.msra.mxu1 %v3919_v14 }
  0x48   :  { %3223 = vmatprep.subr.bf16.mxu0 %v3923_v15  ;;  %3243 = vmatprep.subr.bf16.mxu1 %v3923_v15 }
  0x4a   :  { %347 = vmatmul.mubr.f32.vlgmr.msra.gmra.mrb[0].mxu0 %v3765_v10 }
  0x4b   :  { %3225 = vmatpush1.bf16.msra.mxu0 %v3933_v18  ;;  %431 = vmatprep.mubr.f32.mxu0 %v3765_v10 }
  0x4c   :  { %3135 = vmatprep.subr.msk.mxu0 %vm360_vm3, %v3941_v19 }
  0x4f   :  { %3136 = vmatpush1.msk.msra.mxu0 %vm360_vm3, %v3951_v20 }
  0x50   :  { %3247 = vmatprep.subr.bf16.mxu0 %v3884_v40 }
  0xb5   :  { %v238_v31 = vpop.xlane.xlu0 %237 }
  0xb6   :  { %v240_v32 = vadd.f32 %v238_v31, %v3876_v29  ;;  %v239_v33 = vadd.f32 %v238_v31, %v3878_v30 }
  0xb8   :  { %v243_v34 = vrot.slane %v240_v32, 7 }
  0xba   :  { %v245_v35 = vsel %vm244_vm1, %v243_v34, %v239_v33 }
  0xbb   :  { %v248_v36 = vsel %vm247_vm2, %v245_v35, -inf }
  0xbc   :  { %249 = vmax.xlane.f32.xlu0 %v248_v36  ;;  %v83_v36 = vld [vmem:[%s4554_s3] sm:$0x3] }
  0xd2   :  { %486 = vrot.lane.b32.xlu0 %v3831_v0, %s3766_s9 }
 0x149   :  { %v250_v46 = vpop.xlane.xlu0 %249 }
 0x14a   :  { %v252_v47 = vrot.slane %v250_v46, 1  ;;  %v255_v48 = vsub.f32 %v239_v33, %v250_v46  ;;  %v439_v33 = vlaneseq }
 0x14c   :  { %v256_v49 = vsub.f32 %v240_v32, %v252_v47  ;;  %v257_v50 = vmul.f32 1.442695, %v255_v48  ;;  %v3971_v34 = vshrl.u32 %v439_v33, 7 }
 0x14d   :  { %v3992_v63 = vpop.permute.xlu0 %486 }
 0x14e   :  { %v259_v51 = vmul.f32 1.442695, %v256_v49  ;;  %v441_v35 = vsub.s32 0, %v3971_v34  ;;  %v445_v43 = vsub.s32 1, %v3971_v34 }
 0x150   :  { %3477 = vpow2.f32 %v259_v51  ;;  %v3977_v37 = vrot.slane %v83_v36, %v441_v35  ;;  %v3981_v0 = vrot.slane %v83_v36, %v445_v43 }
 0x151   :  { %3479 = vpow2.f32 %v257_v50 }
 0x15a   :  { %v3478_v52 = vpop.eup %3477 }
 0x15b   :  { %v263_v53 = vrot.slane %v3478_v52, 7  ;;  %v3480_v54 = vpop.eup %3479 }
 0x15d   :  { %v264_v55 = vsel %vm244_vm1, %v263_v53, %v3480_v54 }
 0x15e   :  { %v266_v56 = vsel %vm247_vm2, %v264_v55, 0.0 }
 0x15f   :  { %267 = vadd.xlane.f32.xlu1 %v266_v56 }
 0x1ec   :  { %v268_v21 = vpop.xlane.xlu1 %267 }
 0x1ed   :  { %v270_v22 = vrot.slane %v268_v21, 1  ;;  %3481 = vrcp.f32 %v268_v21 }
 0x1ef   :  { %3483 = vrcp.f32 %v270_v22 }
 0x1f7   :  { %v3482_v23 = vpop.eup %3481 }
 0x1f8   :  { %v274_v25 = vmul.f32 %v3482_v23, %v3480_v54 }
 0x1f9   :  { %v3484_v24 = vpop.eup %3483 }
 0x1fa   :  { %v276_v26 = vmul.f32 %v3484_v24, %v3478_v52  ;;  %v277_v28 = vmul.f32 %v274_v25, %v3849_v9 }
 0x1fc   :  { %v278_v27 = vmul.f32 %v276_v26, %v3844_v8 }
 0x1fe   :  { %v355_v31 = vrot.slane %v278_v27, 7 }
 0x200   :  { %v356_v32 = vsel %vm244_vm1, %v355_v31, %v277_v28 }
 0x201   :  { %3137 = vmatmul.mubr.msk.f32.vlgmr.msra.gmra.mrb[0].mxu0 %vm357_vm4, %v356_v32 }
 0x202   :  { %3249 = vmatpush1.bf16.msra.mxu0 %v3886_v44  ;;  %853 = vmatprep.mubr.f32.mxu0 %v3765_v10 }
 0x203   :  { %3251 = vmatprep.subr.bf16.mxu0 %v3888_v45 }
 0x206   :  { %3253 = vmatpush1.bf16.msra.mxu0 %v3898_v59 }
 0x207   :  { %3255 = vmatprep.subr.bf16.mxu0 %v3902_v62 }
 0x20a   :  { %3257 = vmatpush1.bf16.msra.mxu0 %v3904_v4 }
 0x20b   :  { %3259 = vmatprep.subr.bf16.mxu0 %v3909_v11 }
 0x20e   :  { %3261 = vmatpush1.bf16.msra.mxu0 %v3919_v14 }
 0x20f   :  { %3263 = vmatprep.subr.bf16.mxu0 %v3923_v15 }
 0x2d4   :  { %v433_v38 = vpop.f32.mrb[0].mxu0 }
 0x2d5   :  { %v449_v39 = vadd.f32 %v3977_v37, %v433_v38  ;;  %v435_v41 = vpop.f32.mrb[1].mxu0 }
 0x2d6   :  { %v450_v46 = vadd.f32 %v3981_v0, %v435_v41 }
 0x2d7   :  { %v3138_v42 = vmul.f32 -1.442695, %v449_v39 }
 0x2d8   :  { %v3139_v52 = vmul.f32 -1.442695, %v450_v46 }
 0x2d9   :  { %3485 = vpow2.f32 %v3138_v42 }
 0x2da   :  { %3487 = vtanh.f32 %v450_v46  ;;  %v545_v46 = vrot.slane %v3844_v8, 1 }
 0x2e3   :  { %v3486_v47 = vpop.eup %3485 }
 0x2e4   :  { %v457_v48 = vadd.f32 1.0, %v3486_v47  ;;  %v3488_v49 = vpop.eup %3487 }
 0x2e6   :  { %3489 = vrcp.f32 %v457_v48 }
 0x2e7   :  { %3491 = vpow2.f32 %v3139_v52 }
 0x2f0   :  { %v3490_v50 = vpop.eup %3489 }
 0x2f1   :  { %v465_v51 = vmul.f32 %v3490_v50, %v3488_v49  ;;  %v3492_v53 = vpop.eup %3491  ;;  %v464_v55 = vmul.f32 0.0, %v3490_v50  ;;  %v544_v50 = vrot.slane %v3849_v9, 1 }
 0x2f2   :  { %v458_v54 = vadd.f32 1.0, %v3492_v53 }
 0x2f3   :  { %467 = vrot.lane.b32.xlu1 %v465_v51, %s3766_s9 }
 0x2f4   :  { %3493 = vrcp.f32 %v458_v54 }
 0x2f7   :  { %490 = vrot.lane.b32.xlu1 %v3836_v1, %s3766_s9 }
 0x2fe   :  { %v3494_v58 = vpop.eup %3493 }
 0x365   :  { %v468_v56 = vpop.permute.xlu1 %467 }
 0x366   :  { %v3987_v57 = vadd.f32 %v468_v56, %v464_v55 }
 0x368   :  { %3495 = vtanh.f32 %v3987_v57 }
 0x369   :  { %v3990_v61 = vpop.permute.xlu1 %490 }
 0x36a   :  { %v493_v3 = vmul.f32 %v3990_v61, %v3987_v57 }
 0x372   :  { %v3496_v60 = vpop.eup %3495 }
 0x373   :  { %v3994_v2 = vmul.f32 %v3496_v60, %v3494_v58 }
 0x375   :  { %v489_v1 = vmul.f32 %v3992_v63, %v3994_v2 }
 0x377   :  { %v494_v5 = vadd.f32 %v493_v3, %v489_v1 }
 0x379   :  { %496 = vrot.lane.b32.xlu1 %v494_v5, %s3766_s9 }
 0x3eb   :  { %v497_v6 = vpop.permute.xlu1 %496 }
 0x3ec   :  { %v499_v7 = vsel %vm484_vm5, %v497_v6, 0.0 }
 0x3ed   :  { %500 = vadd.xlane.f32.xlu1 %v499_v7 }
 0x47a   :  { %v501_v12 = vpop.xlane.xlu1 %500 }
 0x47b   :  { %v503_v13 = vrot.slane %v501_v12, 1  ;;  %v506_v17 = vadd.f32 %v501_v12, %v3878_v30 }
 0x47d   :  { %v507_v16 = vadd.f32 %v503_v13, %v3876_v29 }
 0x47f   :  { %v510_v21 = vrot.slane %v507_v16, 7 }
 0x481   :  { %v511_v22 = vsel %vm244_vm1, %v510_v21, %v506_v17 }
 0x482   :  { %v513_v23 = vsel %vm247_vm2, %v511_v22, -inf }
 0x483   :  { %514 = vmax.xlane.f32.xlu0 %v513_v23 }
 0x510   :  { %v515_v24 = vpop.xlane.xlu0 %514 }
 0x511   :  { %v517_v25 = vrot.slane %v515_v24, 1  ;;  %v520_v26 = vsub.f32 %v506_v17, %v515_v24 }
 0x513   :  { %v521_v27 = vsub.f32 %v507_v16, %v517_v25  ;;  %v522_v28 = vmul.f32 1.442695, %v520_v26 }
 0x515   :  { %v524_v31 = vmul.f32 1.442695, %v521_v27 }
 0x517   :  { %3497 = vpow2.f32 %v524_v31 }
 0x518   :  { %3499 = vpow2.f32 %v522_v28 }
 0x521   :  { %v3498_v32 = vpop.eup %3497 }
 0x522   :  { %v528_v33 = vrot.slane %v3498_v32, 7  ;;  %v3500_v35 = vpop.eup %3499 }
 0x524   :  { %v529_v36 = vsel %vm244_vm1, %v528_v33, %v3500_v35 }
 0x525   :  { %v531_v38 = vsel %vm247_vm2, %v529_v36, 0.0 }
 0x526   :  { %532 = vadd.xlane.f32.xlu0 %v531_v38 }
 0x53c   :  { %550 = vrot.lane.b32.xlu0 %v3994_v2, %s3766_s9 }
 0x5b3   :  { %v533_v39 = vpop.xlane.xlu0 %532 }
 0x5b4   :  { %v535_v41 = vrot.slane %v533_v39, 1  ;;  %3501 = vrcp.f32 %v533_v39 }
 0x5b6   :  { %3503 = vrcp.f32 %v535_v41 }
 0x5b7   :  { %v551_v42 = vpop.permute.xlu0 %550 }
 0x5b8   :  { %3140 = vmatmul.mubr.msk.f32.vlgmr.msra.gmra.mrb[0].mxu1 %vm235_vm0, %v551_v42 }
 0x5b9   :  { %3245 = vmatpush1.bf16.msra.mxu1 %v3933_v18  ;;  %695 = vmatprep.mubr.f32.mxu1 %v3765_v10 }
 0x5ba   :  { %3141 = vmatprep.subr.msk.mxu1 %vm360_vm3, %v3941_v19 }
 0x5bd   :  { %3142 = vmatpush1.msk.msra.mxu1 %vm360_vm3, %v3951_v20 }
 0x5be   :  { %v3502_v43 = vpop.eup %3501  ;;  %3267 = vmatprep.subr.bf16.mxu1 %v3884_v40 }
 0x5bf   :  { %v539_v48 = vmul.f32 %v3502_v43, %v3500_v35 }
 0x5c0   :  { %v3504_v47 = vpop.eup %3503 }
 0x5c1   :  { %v541_v49 = vmul.f32 %v3504_v47, %v3498_v32  ;;  %v548_v52 = vmul.f32 %v544_v50, %v539_v48 }
 0x5c3   :  { %v549_v51 = vmul.f32 %v545_v46, %v541_v49 }
 0x5c5   :  { %v627_v53 = vrot.slane %v549_v51, 7 }
 0x5c7   :  { %v628_v54 = vsel %vm244_vm1, %v627_v53, %v548_v52 }
 0x5c8   :  { %3143 = vmatmul.mubr.msk.f32.vlgmr.msra.gmra.mrb[0].mxu1 %vm357_vm4, %v628_v54 }
 0x5c9   :  { %3269 = vmatpush1.bf16.msra.mxu1 %v3886_v44  ;;  %1097 = vmatprep.mubr.f32.mxu1 %v3765_v10 }
 0x5ca   :  { %3271 = vmatprep.subr.bf16.mxu1 %v3888_v45 }
 0x5cd   :  { %3273 = vmatpush1.bf16.msra.mxu1 %v3898_v59 }
 0x5ce   :  { %3275 = vmatprep.subr.bf16.mxu1 %v3902_v62 }
 0x5d1   :  { %3277 = vmatpush1.bf16.msra.mxu1 %v3904_v4 }
 0x5d2   :  { %3279 = vmatprep.subr.bf16.mxu1 %v3909_v11 }
 0x5d5   :  { %3281 = vmatpush1.bf16.msra.mxu1 %v3919_v14 }
 0x5d6   :  { %3283 = vmatprep.subr.bf16.mxu1 %v3923_v15 }
 0x69b   :  { %v697_v55 = vpop.f32.mrb[0].mxu1 }
 0x69c   :  { %v702_v56 = vadd.f32 %v697_v55, %v3977_v37  ;;  %v699_v58 = vpop.f32.mrb[1].mxu1 }
 0x69d   :  { %v703_v1 = vadd.f32 %v699_v58, %v3981_v0 }
 0x69e   :  { %v3144_v60 = vmul.f32 -1.442695, %v702_v56 }
 0x69f   :  { %v3145_v13 = vmul.f32 -1.442695, %v703_v1 }
 0x6a0   :  { %3505 = vpow2.f32 %v3144_v60 }
 0x6a1   :  { %3507 = vtanh.f32 %v703_v1 }
 0x6aa   :  { %v3506_v3 = vpop.eup %3505 }
 0x6ab   :  { %v710_v5 = vadd.f32 1.0, %v3506_v3  ;;  %v3508_v6 = vpop.eup %3507  ;;  %v779_v3 = vrot.slane %v3844_v8, 2 }
 0x6ad   :  { %3509 = vrcp.f32 %v710_v5 }
 0x6ae   :  { %3511 = vpow2.f32 %v3145_v13 }
 0x6b7   :  { %v3510_v7 = vpop.eup %3509 }
 0x6b8   :  { %v718_v12 = vmul.f32 %v3510_v7, %v3508_v6  ;;  %v3512_v16 = vpop.eup %3511  ;;  %v717_v21 = vmul.f32 %v3510_v7, %v3987_v57 }
 0x6b9   :  { %v711_v17 = vadd.f32 1.0, %v3512_v16 }
 0x6ba   :  { %720 = vrot.lane.b32.xlu1 %v718_v12, %s3766_s9  ;;  %v778_v12 = vrot.slane %v3849_v9, 2 }
 0x6bb   :  { %3513 = vrcp.f32 %v711_v17 }
 0x6c5   :  { %v3514_v24 = vpop.eup %3513 }
 0x72c   :  { %v721_v22 = vpop.permute.xlu1 %720 }
 0x72d   :  { %v4035_v23 = vadd.f32 %v721_v22, %v717_v21 }
 0x72f   :  { %3515 = vtanh.f32 %v4035_v23  ;;  %v729_v27 = vmul.f32 %v4035_v23, %v3990_v61 }
 0x739   :  { %v3516_v25 = vpop.eup %3515 }
 0x73a   :  { %v4038_v26 = vmul.f32 %v3516_v25, %v3514_v24 }
 0x73c   :  { %v728_v28 = vmul.f32 %v4038_v26, %v3992_v63 }
 0x73e   :  { %v730_v31 = vadd.f32 %v729_v27, %v728_v28 }
 0x740   :  { %732 = vrot.lane.b32.xlu1 %v730_v31, %s3766_s9 }
 0x7b2   :  { %v733_v57 = vpop.permute.xlu1 %732 }
 0x7b3   :  { %v735_v32 = vsel %vm484_vm5, %v733_v57, 0.0 }
 0x7b4   :  { %736 = vadd.xlane.f32.xlu1 %v735_v32 }
 0x841   :  { %v737_v33 = vpop.xlane.xlu1 %736 }
 0x842   :  { %v739_v35 = vrot.slane %v737_v33, 1  ;;  %v742_v38 = vadd.f32 %v737_v33, %v3878_v30 }
 0x844   :  { %v743_v36 = vadd.f32 %v739_v35, %v3876_v29 }
 0x846   :  { %v746_v39 = vrot.slane %v743_v36, 7 }
 0x848   :  { %v747_v41 = vsel %vm244_vm1, %v746_v39, %v742_v38 }
 0x849   :  { %v749_v42 = vsel %vm247_vm2, %v747_v41, -inf }
 0x84a   :  { %750 = vmax.xlane.f32.xlu0 %v749_v42 }
 0x8d7   :  { %v751_v43 = vpop.xlane.xlu0 %750 }
 0x8d8   :  { %v753_v46 = vrot.slane %v751_v43, 1  ;;  %v756_v47 = vsub.f32 %v742_v38, %v751_v43 }
 0x8da   :  { %v757_v48 = vsub.f32 %v743_v36, %v753_v46  ;;  %v758_v49 = vmul.f32 1.442695, %v756_v47 }
 0x8dc   :  { %v760_v50 = vmul.f32 1.442695, %v757_v48 }
 0x8de   :  { %3517 = vpow2.f32 %v760_v50 }
 0x8df   :  { %3519 = vpow2.f32 %v758_v49 }
 0x8e8   :  { %v3518_v51 = vpop.eup %3517 }
 0x8e9   :  { %v764_v52 = vrot.slane %v3518_v51, 7  ;;  %v3520_v53 = vpop.eup %3519 }
 0x8eb   :  { %v765_v54 = vsel %vm244_vm1, %v764_v52, %v3520_v53 }
 0x8ec   :  { %v767_v55 = vsel %vm247_vm2, %v765_v54, 0.0 }
 0x8ed   :  { %768 = vadd.xlane.f32.xlu0 %v767_v55 }
 0x903   :  { %785 = vrot.lane.b32.xlu0 %v4038_v26, %s3766_s9 }
 0x97a   :  { %v769_v56 = vpop.xlane.xlu0 %768 }
 0x97b   :  { %v771_v58 = vrot.slane %v769_v56, 1  ;;  %3521 = vrcp.f32 %v769_v56 }
 0x97d   :  { %3523 = vrcp.f32 %v771_v58 }
 0x97e   :  { %v786_v60 = vpop.permute.xlu0 %785 }
 0x97f   :  { %3146 = vmatmul.mubr.msk.f32.vlgmr.msra.gmra.mrb[2].mxu0 %vm235_vm0, %v786_v60 }
 0x980   :  { %3265 = vmatpush1.bf16.msra.mxu0 %v3933_v18  ;;  %930 = vmatprep.mubr.f32.mxu0 %v3765_v10 }
 0x981   :  { %3147 = vmatprep.subr.msk.mxu0 %vm360_vm3, %v3941_v19 }
 0x984   :  { %3148 = vmatpush1.msk.msra.mxu0 %vm360_vm3, %v3951_v20 }
 0x985   :  { %v3522_v1 = vpop.eup %3521  ;;  %3287 = vmatprep.subr.bf16.mxu0 %v3884_v40 }
 0x986   :  { %v775_v6 = vmul.f32 %v3522_v1, %v3520_v53 }
 0x987   :  { %v3524_v5 = vpop.eup %3523 }
 0x988   :  { %v777_v7 = vmul.f32 %v3524_v5, %v3518_v51  ;;  %v782_v16 = vmul.f32 %v778_v12, %v775_v6 }
 0x98a   :  { %v783_v13 = vmul.f32 %v779_v3, %v777_v7 }
 0x98c   :  { %v862_v17 = vrot.slane %v783_v13, 7 }
 0x98e   :  { %v863_v21 = vsel %vm244_vm1, %v862_v17, %v782_v16 }
 0x98f   :  { %3149 = vmatmul.mubr.msk.f32.vlgmr.msra.gmra.mrb[2].mxu0 %vm357_vm4, %v863_v21 }
 0x990   :  { %3289 = vmatpush1.bf16.msra.mxu0 %v3886_v44  ;;  %1331 = vmatprep.mubr.f32.mxu0 %v3765_v10 }
 0x991   :  { %3291 = vmatprep.subr.bf16.mxu0 %v3888_v45 }
 0x994   :  { %3293 = vmatpush1.bf16.msra.mxu0 %v3898_v59 }
 0x995   :  { %3295 = vmatprep.subr.bf16.mxu0 %v3902_v62 }
 0x998   :  { %3297 = vmatpush1.bf16.msra.mxu0 %v3904_v4 }
 0x999   :  { %3299 = vmatprep.subr.bf16.mxu0 %v3909_v11 }
 0x99c   :  { %3301 = vmatpush1.bf16.msra.mxu0 %v3919_v14 }
 0x99d   :  { %3303 = vmatprep.subr.bf16.mxu0 %v3923_v15 }
 0xa62   :  { %v932_v22 = vpop.f32.mrb[2].mxu0 }
 0xa63   :  { %v937_v24 = vadd.f32 %v932_v22, %v3977_v37  ;;  %v934_v25 = vpop.f32.mrb[3].mxu0 }
 0xa64   :  { %v938_v28 = vadd.f32 %v934_v25, %v3981_v0 }
 0xa65   :  { %v3150_v27 = vmul.f32 -1.442695, %v937_v24 }
 0xa66   :  { %v3151_v36 = vmul.f32 -1.442695, %v938_v28 }
 0xa67   :  { %3525 = vpow2.f32 %v3150_v27 }
 0xa68   :  { %3527 = vtanh.f32 %v938_v28 }
 0xa71   :  { %v3526_v31 = vpop.eup %3525 }
 0xa72   :  { %v945_v57 = vadd.f32 1.0, %v3526_v31  ;;  %v3528_v32 = vpop.eup %3527 }
 0xa74   :  { %3529 = vrcp.f32 %v945_v57  ;;  %v1024_v57 = vrot.slane %v3844_v8, 3 }
 0xa75   :  { %3531 = vpow2.f32 %v3151_v36  ;;  %v1023_v36 = vrot.slane %v3849_v9, 3 }
 0xa7e   :  { %v3530_v33 = vpop.eup %3529 }
 0xa7f   :  { %v953_v35 = vmul.f32 %v3530_v33, %v3528_v32  ;;  %v3532_v38 = vpop.eup %3531  ;;  %v952_v41 = vmul.f32 %v3530_v33, %v4035_v23 }
 0xa80   :  { %v946_v39 = vadd.f32 1.0, %v3532_v38 }
 0xa81   :  { %955 = vrot.lane.b32.xlu1 %v953_v35, %s3766_s9 }
 0xa82   :  { %3533 = vrcp.f32 %v946_v39 }
 0xa8c   :  { %v3534_v46 = vpop.eup %3533 }
 0xaf3   :  { %v956_v42 = vpop.permute.xlu1 %955 }
 0xaf4   :  { %v4079_v43 = vadd.f32 %v956_v42, %v952_v41 }
 0xaf6   :  { %3535 = vtanh.f32 %v4079_v43  ;;  %v974_v49 = vmul.f32 %v4079_v43, %v3990_v61 }
 0xb00   :  { %v3536_v47 = vpop.eup %3535 }
 0xb01   :  { %v4082_v48 = vmul.f32 %v3536_v47, %v3534_v46 }
 0xb03   :  { %v973_v50 = vmul.f32 %v4082_v48, %v3992_v63 }
 0xb05   :  { %v975_v51 = vadd.f32 %v974_v49, %v973_v50 }
 0xb07   :  { %977 = vrot.lane.b32.xlu1 %v975_v51, %s3766_s9 }
 0xb79   :  { %v978_v23 = vpop.permute.xlu1 %977 }
 0xb7a   :  { %v980_v52 = vsel %vm484_vm5, %v978_v23, 0.0 }
 0xb7b   :  { %981 = vadd.xlane.f32.xlu1 %v980_v52 }
 0xc08   :  { %v982_v53 = vpop.xlane.xlu1 %981 }
 0xc09   :  { %v984_v54 = vrot.slane %v982_v53, 1  ;;  %v987_v56 = vadd.f32 %v982_v53, %v3878_v30 }
 0xc0b   :  { %v988_v55 = vadd.f32 %v984_v54, %v3876_v29 }
 0xc0d   :  { %v991_v58 = vrot.slane %v988_v55, 7 }
 0xc0f   :  { %v992_v60 = vsel %vm244_vm1, %v991_v58, %v987_v56 }
 0xc10   :  { %v994_v1 = vsel %vm247_vm2, %v992_v60, -inf }
 0xc11   :  { %995 = vmax.xlane.f32.xlu0 %v994_v1 }
 0xc9e   :  { %v996_v3 = vpop.xlane.xlu0 %995 }
 0xc9f   :  { %v998_v5 = vrot.slane %v996_v3, 1  ;;  %v1001_v6 = vsub.f32 %v987_v56, %v996_v3 }
 0xca1   :  { %v1002_v7 = vsub.f32 %v988_v55, %v998_v5  ;;  %v1003_v12 = vmul.f32 1.442695, %v1001_v6 }
 0xca3   :  { %v1005_v13 = vmul.f32 1.442695, %v1002_v7 }
 0xca5   :  { %3537 = vpow2.f32 %v1005_v13 }
 0xca6   :  { %3539 = vpow2.f32 %v1003_v12 }
 0xcaf   :  { %v3538_v16 = vpop.eup %3537 }
 0xcb0   :  { %v1009_v17 = vrot.slane %v3538_v16, 7  ;;  %v3540_v21 = vpop.eup %3539 }
 0xcb2   :  { %v1010_v22 = vsel %vm244_vm1, %v1009_v17, %v3540_v21 }
 0xcb3   :  { %v1012_v24 = vsel %vm247_vm2, %v1010_v22, 0.0 }
 0xcb4   :  { %1013 = vadd.xlane.f32.xlu0 %v1012_v24 }
 0xcca   :  { %1029 = vrot.lane.b32.xlu0 %v4082_v48, %s3766_s9 }
 0xd41   :  { %v1014_v25 = vpop.xlane.xlu0 %1013 }
 0xd42   :  { %v1016_v27 = vrot.slane %v1014_v25, 1  ;;  %3541 = vrcp.f32 %v1014_v25 }
 0xd44   :  { %3543 = vrcp.f32 %v1016_v27 }
 0xd45   :  { %v1030_v28 = vpop.permute.xlu0 %1029 }
 0xd46   :  { %3152 = vmatmul.mubr.msk.f32.vlgmr.msra.gmra.mrb[2].mxu1 %vm235_vm0, %v1030_v28 }
 0xd47   :  { %3285 = vmatpush1.bf16.msra.mxu1 %v3933_v18  ;;  %1174 = vmatprep.mubr.f32.mxu1 %v3765_v10 }
 0xd48   :  { %3153 = vmatprep.subr.msk.mxu1 %vm360_vm3, %v3941_v19 }
 0xd4b   :  { %3154 = vmatpush1.msk.msra.mxu1 %vm360_vm3, %v3951_v20 }
 0xd4c   :  { %v3542_v31 = vpop.eup %3541  ;;  %3307 = vmatprep.subr.bf16.mxu1 %v3884_v40 }
 0xd4d   :  { %v1020_v33 = vmul.f32 %v3542_v31, %v3540_v21 }
 0xd4e   :  { %v3544_v32 = vpop.eup %3543 }
 0xd4f   :  { %v1022_v35 = vmul.f32 %v3544_v32, %v3538_v16  ;;  %v1027_v39 = vmul.f32 %v1023_v36, %v1020_v33 }
 0xd51   :  { %v1028_v38 = vmul.f32 %v1024_v57, %v1022_v35 }
 0xd53   :  { %v1106_v41 = vrot.slane %v1028_v38, 7 }
 0xd55   :  { %v1107_v42 = vsel %vm244_vm1, %v1106_v41, %v1027_v39 }
 0xd56   :  { %3155 = vmatmul.mubr.msk.f32.vlgmr.msra.gmra.mrb[2].mxu1 %vm357_vm4, %v1107_v42 }
 0xd57   :  { %3309 = vmatpush1.bf16.msra.mxu1 %v3886_v44  ;;  %1575 = vmatprep.mubr.f32.mxu1 %v3765_v10 }
 0xd58   :  { %3311 = vmatprep.subr.bf16.mxu1 %v3888_v45 }
 0xd5b   :  { %3313 = vmatpush1.bf16.msra.mxu1 %v3898_v59 }
 0xd5c   :  { %3315 = vmatprep.subr.bf16.mxu1 %v3902_v62 }
 0xd5f   :  { %3317 = vmatpush1.bf16.msra.mxu1 %v3904_v4 }
 0xd60   :  { %3319 = vmatprep.subr.bf16.mxu1 %v3909_v11 }
 0xd63   :  { %3321 = vmatpush1.bf16.msra.mxu1 %v3919_v14 }
 0xd64   :  { %3323 = vmatprep.subr.bf16.mxu1 %v3923_v15 }
 0xe29   :  { %v1176_v8 = vpop.f32.mrb[2].mxu1 }
 0xe2a   :  { %v1181_v9 = vadd.f32 %v1176_v8, %v3977_v37  ;;  %v1178_v46 = vpop.f32.mrb[3].mxu1 }
 0xe2b   :  { %v1182_v49 = vadd.f32 %v1178_v46, %v3981_v0 }
 0xe2c   :  { %v3156_v47 = vmul.f32 -1.442695, %v1181_v9 }
 0xe2d   :  { %v3157_v54 = vmul.f32 -1.442695, %v1182_v49 }
 0xe2e   :  { %3545 = vpow2.f32 %v3156_v47 }
 0xe2f   :  { %3547 = vtanh.f32 %v1182_v49 }
 0xe38   :  { %v3546_v50 = vpop.eup %3545 }
 0xe39   :  { %v1189_v51 = vadd.f32 1.0, %v3546_v50  ;;  %v3548_v23 = vpop.eup %3547  ;;  %v4153_v50 = vld [vmem:[%s4551_s0 + $0x10] sm:$0xff] }
 0xe3b   :  { %3549 = vrcp.f32 %v1189_v51  ;;  %v1257_v51 = vrot.slane %v4153_v50, 4 }
 0xe3c   :  { %3551 = vpow2.f32 %v3157_v54  ;;  %v4159_v54 = vld [vmem:[%s4551_s0] sm:$0xff] }
 0xe45   :  { %v3550_v52 = vpop.eup %3549 }
 0xe46   :  { %v1197_v53 = vmul.f32 %v3550_v52, %v3548_v23  ;;  %v3552_v55 = vpop.eup %3551  ;;  %v1196_v58 = vmul.f32 %v3550_v52, %v4079_v43 }
 0xe47   :  { %v1190_v56 = vadd.f32 1.0, %v3552_v55  ;;  %v1256_v55 = vrot.slane %v4159_v54, 4 }
 0xe48   :  { %1199 = vrot.lane.b32.xlu1 %v1197_v53, %s3766_s9 }
 0xe49   :  { %3553 = vrcp.f32 %v1190_v56 }
 0xe53   :  { %v3554_v3 = vpop.eup %3553 }
 0xeba   :  { %v1200_v60 = vpop.permute.xlu1 %1199 }
 0xebb   :  { %v4123_v1 = vadd.f32 %v1200_v60, %v1196_v58 }
 0xebd   :  { %3555 = vtanh.f32 %v4123_v1  ;;  %v1207_v7 = vmul.f32 %v4123_v1, %v3990_v61 }
 0xec7   :  { %v3556_v5 = vpop.eup %3555 }
 0xec8   :  { %v4126_v6 = vmul.f32 %v3556_v5, %v3554_v3 }
 0xeca   :  { %v1206_v12 = vmul.f32 %v4126_v6, %v3992_v63 }
 0xecc   :  { %v1208_v13 = vadd.f32 %v1207_v7, %v1206_v12 }
 0xece   :  { %1210 = vrot.lane.b32.xlu1 %v1208_v13, %s3766_s9 }
 0xf40   :  { %v1211_v43 = vpop.permute.xlu1 %1210 }
 0xf41   :  { %v1213_v16 = vsel %vm484_vm5, %v1211_v43, 0.0 }
 0xf42   :  { %1214 = vadd.xlane.f32.xlu1 %v1213_v16 }
 0xfcf   :  { %v1215_v17 = vpop.xlane.xlu1 %1214 }
 0xfd0   :  { %v1217_v21 = vrot.slane %v1215_v17, 1  ;;  %v1220_v24 = vadd.f32 %v1215_v17, %v3878_v30 }
 0xfd2   :  { %v1221_v22 = vadd.f32 %v1217_v21, %v3876_v29 }
 0xfd4   :  { %v1224_v25 = vrot.slane %v1221_v22, 7 }
 0xfd6   :  { %v1225_v27 = vsel %vm244_vm1, %v1224_v25, %v1220_v24 }
 0xfd7   :  { %v1227_v28 = vsel %vm247_vm2, %v1225_v27, -inf }
 0xfd8   :  { %1228 = vmax.xlane.f32.xlu0 %v1227_v28 }
0x1065   :  { %v1229_v31 = vpop.xlane.xlu0 %1228 }
0x1066   :  { %v1231_v57 = vrot.slane %v1229_v31, 1  ;;  %v1234_v32 = vsub.f32 %v1220_v24, %v1229_v31 }
0x1068   :  { %v1235_v33 = vsub.f32 %v1221_v22, %v1231_v57  ;;  %v1236_v35 = vmul.f32 1.442695, %v1234_v32 }
0x106a   :  { %v1238_v36 = vmul.f32 1.442695, %v1235_v33 }
0x106c   :  { %3557 = vpow2.f32 %v1238_v36 }
0x106d   :  { %3559 = vpow2.f32 %v1236_v35 }
0x1076   :  { %v3558_v38 = vpop.eup %3557 }
0x1077   :  { %v1242_v39 = vrot.slane %v3558_v38, 7  ;;  %v3560_v41 = vpop.eup %3559 }
0x1079   :  { %v1243_v42 = vsel %vm244_vm1, %v1242_v39, %v3560_v41 }
0x107a   :  { %v1245_v8 = vsel %vm247_vm2, %v1243_v42, 0.0 }
0x107b   :  { %1246 = vadd.xlane.f32.xlu0 %v1245_v8 }
0x1091   :  { %1263 = vrot.lane.b32.xlu0 %v4126_v6, %s3766_s9 }
0x1108   :  { %v1247_v9 = vpop.xlane.xlu0 %1246 }
0x1109   :  { %v1249_v46 = vrot.slane %v1247_v9, 1  ;;  %3561 = vrcp.f32 %v1247_v9 }
0x110b   :  { %3563 = vrcp.f32 %v1249_v46 }
0x110c   :  { %v1264_v47 = vpop.permute.xlu0 %1263 }
0x110d   :  { %3158 = vmatmul.mubr.msk.f32.vlgmr.msra.gmra.mrb[4].mxu0 %vm235_vm0, %v1264_v47 }
0x110e   :  { %3305 = vmatpush1.bf16.msra.mxu0 %v3933_v18  ;;  %1408 = vmatprep.mubr.f32.mxu0 %v3765_v10 }
0x110f   :  { %3159 = vmatprep.subr.msk.mxu0 %vm360_vm3, %v3941_v19 }
0x1112   :  { %3160 = vmatpush1.msk.msra.mxu0 %vm360_vm3, %v3951_v20 }
0x1113   :  { %v3562_v49 = vpop.eup %3561  ;;  %3327 = vmatprep.subr.bf16.mxu0 %v3884_v40 }
0x1114   :  { %v1253_v52 = vmul.f32 %v3562_v49, %v3560_v41 }
0x1115   :  { %v3564_v23 = vpop.eup %3563 }
0x1116   :  { %v1255_v53 = vmul.f32 %v3564_v23, %v3558_v38  ;;  %v1260_v58 = vmul.f32 %v1256_v55, %v1253_v52 }
0x1118   :  { %v1261_v56 = vmul.f32 %v1257_v51, %v1255_v53 }
0x111a   :  { %v1340_v60 = vrot.slane %v1261_v56, 7 }
0x111c   :  { %v1341_v3 = vsel %vm244_vm1, %v1340_v60, %v1260_v58 }
0x111d   :  { %3161 = vmatmul.mubr.msk.f32.vlgmr.msra.gmra.mrb[4].mxu0 %vm357_vm4, %v1341_v3 }
0x111e   :  { %3329 = vmatpush1.bf16.msra.mxu0 %v3886_v44  ;;  %1809 = vmatprep.mubr.f32.mxu0 %v3765_v10 }
0x111f   :  { %3331 = vmatprep.subr.bf16.mxu0 %v3888_v45 }
0x1122   :  { %3333 = vmatpush1.bf16.msra.mxu0 %v3898_v59 }
0x1123   :  { %3335 = vmatprep.subr.bf16.mxu0 %v3902_v62 }
0x1126   :  { %3337 = vmatpush1.bf16.msra.mxu0 %v3904_v4 }
0x1127   :  { %3339 = vmatprep.subr.bf16.mxu0 %v3909_v11 }
0x112a   :  { %3341 = vmatpush1.bf16.msra.mxu0 %v3919_v14 }
0x112b   :  { %3343 = vmatprep.subr.bf16.mxu0 %v3923_v15 }
0x11f0   :  { %v1410_v5 = vpop.f32.mrb[4].mxu0 }
0x11f1   :  { %v1415_v7 = vadd.f32 %v1410_v5, %v3977_v37  ;;  %v1412_v12 = vpop.f32.mrb[5].mxu0 }
0x11f2   :  { %v1416_v43 = vadd.f32 %v1412_v12, %v3981_v0 }
0x11f3   :  { %v3162_v13 = vmul.f32 -1.442695, %v1415_v7 }
0x11f4   :  { %v3163_v25 = vmul.f32 -1.442695, %v1416_v43 }
0x11f5   :  { %3565 = vpow2.f32 %v3162_v13 }
0x11f6   :  { %3567 = vtanh.f32 %v1416_v43 }
0x11ff   :  { %v3566_v16 = vpop.eup %3565 }
0x1200   :  { %v1423_v17 = vadd.f32 1.0, %v3566_v16  ;;  %v3568_v21 = vpop.eup %3567 }
0x1202   :  { %3569 = vrcp.f32 %v1423_v17 }
0x1203   :  { %3571 = vpow2.f32 %v3163_v25 }
0x120c   :  { %v3570_v22 = vpop.eup %3569 }
0x120d   :  { %v1431_v24 = vmul.f32 %v3570_v22, %v3568_v21  ;;  %v3572_v27 = vpop.eup %3571  ;;  %v1430_v31 = vmul.f32 %v3570_v22, %v4123_v1  ;;  %v1502_v22 = vrot.slane %v4153_v50, 5 }
0x120e   :  { %v1424_v28 = vadd.f32 1.0, %v3572_v27 }
0x120f   :  { %1433 = vrot.lane.b32.xlu1 %v1431_v24, %s3766_s9 }
0x1210   :  { %3573 = vrcp.f32 %v1424_v28  ;;  %v1501_v28 = vrot.slane %v4159_v54, 5 }
0x121a   :  { %v3574_v33 = vpop.eup %3573 }
0x1281   :  { %v1434_v57 = vpop.permute.xlu1 %1433 }
0x1282   :  { %v4177_v32 = vadd.f32 %v1434_v57, %v1430_v31 }
0x1284   :  { %3575 = vtanh.f32 %v4177_v32  ;;  %v1452_v38 = vmul.f32 %v4177_v32, %v3990_v61 }
0x128e   :  { %v3576_v35 = vpop.eup %3575 }
0x128f   :  { %v4180_v36 = vmul.f32 %v3576_v35, %v3574_v33 }
0x1291   :  { %v1451_v39 = vmul.f32 %v4180_v36, %v3992_v63 }
0x1293   :  { %v1453_v41 = vadd.f32 %v1452_v38, %v1451_v39 }
0x1295   :  { %1455 = vrot.lane.b32.xlu1 %v1453_v41, %s3766_s9 }
0x1307   :  { %v1456_v1 = vpop.permute.xlu1 %1455 }
0x1308   :  { %v1458_v42 = vsel %vm484_vm5, %v1456_v1, 0.0 }
0x1309   :  { %1459 = vadd.xlane.f32.xlu1 %v1458_v42 }
0x1396   :  { %v1460_v8 = vpop.xlane.xlu1 %1459 }
0x1397   :  { %v1462_v9 = vrot.slane %v1460_v8, 1  ;;  %v1465_v47 = vadd.f32 %v1460_v8, %v3878_v30 }
0x1399   :  { %v1466_v46 = vadd.f32 %v1462_v9, %v3876_v29 }
0x139b   :  { %v1469_v49 = vrot.slane %v1466_v46, 7 }
0x139d   :  { %v1470_v51 = vsel %vm244_vm1, %v1469_v49, %v1465_v47 }
0x139e   :  { %v1472_v23 = vsel %vm247_vm2, %v1470_v51, -inf }
0x139f   :  { %1473 = vmax.xlane.f32.xlu0 %v1472_v23 }
0x142c   :  { %v1474_v52 = vpop.xlane.xlu0 %1473 }
0x142d   :  { %v1476_v53 = vrot.slane %v1474_v52, 1  ;;  %v1479_v55 = vsub.f32 %v1465_v47, %v1474_v52 }
0x142f   :  { %v1480_v56 = vsub.f32 %v1466_v46, %v1476_v53  ;;  %v1481_v58 = vmul.f32 1.442695, %v1479_v55 }
0x1431   :  { %v1483_v60 = vmul.f32 1.442695, %v1480_v56 }
0x1433   :  { %3577 = vpow2.f32 %v1483_v60 }
0x1434   :  { %3579 = vpow2.f32 %v1481_v58 }
0x143d   :  { %v3578_v3 = vpop.eup %3577 }
0x143e   :  { %v1487_v5 = vrot.slane %v3578_v3, 7  ;;  %v3580_v7 = vpop.eup %3579 }
0x1440   :  { %v1488_v12 = vsel %vm244_vm1, %v1487_v5, %v3580_v7 }
0x1441   :  { %v1490_v13 = vsel %vm247_vm2, %v1488_v12, 0.0 }
0x1442   :  { %1491 = vadd.xlane.f32.xlu0 %v1490_v13 }
0x1458   :  { %1507 = vrot.lane.b32.xlu0 %v4180_v36, %s3766_s9 }
0x14cf   :  { %v1492_v43 = vpop.xlane.xlu0 %1491 }
0x14d0   :  { %v1494_v16 = vrot.slane %v1492_v43, 1  ;;  %3581 = vrcp.f32 %v1492_v43 }
0x14d2   :  { %3583 = vrcp.f32 %v1494_v16 }
0x14d3   :  { %v1508_v17 = vpop.permute.xlu0 %1507 }
0x14d4   :  { %3164 = vmatmul.mubr.msk.f32.vlgmr.msra.gmra.mrb[4].mxu1 %vm235_vm0, %v1508_v17 }
0x14d5   :  { %3325 = vmatpush1.bf16.msra.mxu1 %v3933_v18  ;;  %1652 = vmatprep.mubr.f32.mxu1 %v3765_v10 }
0x14d6   :  { %3165 = vmatprep.subr.msk.mxu1 %vm360_vm3, %v3941_v19 }
0x14d9   :  { %3166 = vmatpush1.msk.msra.mxu1 %vm360_vm3, %v3951_v20 }
0x14da   :  { %v3582_v21 = vpop.eup %3581  ;;  %3347 = vmatprep.subr.bf16.mxu1 %v3884_v40 }
0x14db   :  { %v1498_v25 = vmul.f32 %v3582_v21, %v3580_v7 }
0x14dc   :  { %v3584_v24 = vpop.eup %3583 }
0x14dd   :  { %v1500_v27 = vmul.f32 %v3584_v24, %v3578_v3  ;;  %v1505_v57 = vmul.f32 %v1501_v28, %v1498_v25 }
0x14df   :  { %v1506_v31 = vmul.f32 %v1502_v22, %v1500_v27 }
0x14e1   :  { %v1584_v33 = vrot.slane %v1506_v31, 7 }
0x14e3   :  { %v1585_v35 = vsel %vm244_vm1, %v1584_v33, %v1505_v57 }
0x14e4   :  { %3167 = vmatmul.mubr.msk.f32.vlgmr.msra.gmra.mrb[4].mxu1 %vm357_vm4, %v1585_v35 }
0x14e5   :  { %3349 = vmatpush1.bf16.msra.mxu1 %v3886_v44  ;;  %2053 = vmatprep.mubr.f32.mxu1 %v3765_v10 }
0x14e6   :  { %3351 = vmatprep.subr.bf16.mxu1 %v3888_v45 }
0x14e9   :  { %3353 = vmatpush1.bf16.msra.mxu1 %v3898_v59 }
0x14ea   :  { %3355 = vmatprep.subr.bf16.mxu1 %v3902_v62 }
0x14ed   :  { %3357 = vmatpush1.bf16.msra.mxu1 %v3904_v4 }
0x14ee   :  { %3359 = vmatprep.subr.bf16.mxu1 %v3909_v11 }
0x14f1   :  { %3361 = vmatpush1.bf16.msra.mxu1 %v3919_v14 }
0x14f2   :  { %3363 = vmatprep.subr.bf16.mxu1 %v3923_v15 }
0x15b7   :  { %v1654_v19 = vpop.f32.mrb[4].mxu1 }
0x15b8   :  { %v1659_v20 = vadd.f32 %v1654_v19, %v3977_v37  ;;  %v1656_v38 = vpop.f32.mrb[5].mxu1 }
0x15b9   :  { %v1660_v41 = vadd.f32 %v1656_v38, %v3981_v0 }
0x15ba   :  { %v3168_v39 = vmul.f32 -1.442695, %v1659_v20 }
0x15bb   :  { %v3169_v47 = vmul.f32 -1.442695, %v1660_v41 }
0x15bc   :  { %3585 = vpow2.f32 %v3168_v39 }
0x15bd   :  { %3587 = vtanh.f32 %v1660_v41 }
0x15c6   :  { %v3586_v1 = vpop.eup %3585 }
0x15c7   :  { %v1667_v42 = vadd.f32 1.0, %v3586_v1  ;;  %v3588_v8 = vpop.eup %3587 }
0x15c9   :  { %3589 = vrcp.f32 %v1667_v42  ;;  %v4246_v42 = vld [vmem:[%s4552_s1 + $0x28] sm:$0x3f] }
0x15ca   :  { %3591 = vpow2.f32 %v3169_v47 }
0x15d3   :  { %v3590_v9 = vpop.eup %3589 }
0x15d4   :  { %v1675_v46 = vmul.f32 %v3590_v9, %v3588_v8  ;;  %v3592_v49 = vpop.eup %3591  ;;  %v1674_v23 = vmul.f32 %v3590_v9, %v4177_v32  ;;  %v4253_v8 = vld [vmem:[%s4552_s1 + $0x20] sm:$0x3f] }
0x15d5   :  { %v1668_v51 = vadd.f32 1.0, %v3592_v49 }
0x15d6   :  { %1677 = vrot.lane.b32.xlu1 %v1675_v46, %s3766_s9  ;;  %v1735_v46 = vrot.slane %v4153_v50, 6 }
0x15d7   :  { %3593 = vrcp.f32 %v1668_v51 }
0x15e1   :  { %v3594_v55 = vpop.eup %3593 }
0x1648   :  { %v1678_v52 = vpop.permute.xlu1 %1677 }
0x1649   :  { %v4221_v53 = vadd.f32 %v1678_v52, %v1674_v23  ;;  %v1734_v23 = vrot.slane %v4159_v54, 6 }
0x164b   :  { %3595 = vtanh.f32 %v4221_v53  ;;  %v1685_v60 = vmul.f32 %v4221_v53, %v3990_v61 }
0x1655   :  { %v3596_v56 = vpop.eup %3595 }
0x1656   :  { %v4224_v58 = vmul.f32 %v3596_v56, %v3594_v55 }
0x1658   :  { %v1684_v3 = vmul.f32 %v4224_v58, %v3992_v63 }
0x165a   :  { %v1686_v5 = vadd.f32 %v1685_v60, %v1684_v3 }
0x165c   :  { %1688 = vrot.lane.b32.xlu1 %v1686_v5, %s3766_s9 }
0x16ce   :  { %v1689_v32 = vpop.permute.xlu1 %1688 }
0x16cf   :  { %v1691_v7 = vsel %vm484_vm5, %v1689_v32, 0.0 }
0x16d0   :  { %1692 = vadd.xlane.f32.xlu1 %v1691_v7 }
0x175d   :  { %v1693_v12 = vpop.xlane.xlu1 %1692 }
0x175e   :  { %v1695_v13 = vrot.slane %v1693_v12, 1  ;;  %v1698_v16 = vadd.f32 %v1693_v12, %v3878_v30 }
0x1760   :  { %v1699_v43 = vadd.f32 %v1695_v13, %v3876_v29 }
0x1762   :  { %v1702_v17 = vrot.slane %v1699_v43, 7 }
0x1764   :  { %v1703_v21 = vsel %vm244_vm1, %v1702_v17, %v1698_v16 }
0x1765   :  { %v1705_v22 = vsel %vm247_vm2, %v1703_v21, -inf }
0x1766   :  { %1706 = vmax.xlane.f32.xlu0 %v1705_v22 }
0x17f3   :  { %v1707_v24 = vpop.xlane.xlu0 %1706 }
0x17f4   :  { %v1709_v25 = vrot.slane %v1707_v24, 1  ;;  %v1712_v27 = vsub.f32 %v1698_v16, %v1707_v24 }
0x17f6   :  { %v1713_v28 = vsub.f32 %v1699_v43, %v1709_v25  ;;  %v1714_v31 = vmul.f32 1.442695, %v1712_v27 }
0x17f8   :  { %v1716_v57 = vmul.f32 1.442695, %v1713_v28 }
0x17fa   :  { %3597 = vpow2.f32 %v1716_v57 }
0x17fb   :  { %3599 = vpow2.f32 %v1714_v31 }
0x1804   :  { %v3598_v33 = vpop.eup %3597 }
0x1805   :  { %v1720_v35 = vrot.slane %v3598_v33, 7  ;;  %v3600_v19 = vpop.eup %3599 }
0x1807   :  { %v1721_v20 = vsel %vm244_vm1, %v1720_v35, %v3600_v19 }
0x1808   :  { %v1723_v38 = vsel %vm247_vm2, %v1721_v20, 0.0 }
0x1809   :  { %1724 = vadd.xlane.f32.xlu0 %v1723_v38 }
0x181f   :  { %1741 = vrot.lane.b32.xlu0 %v4224_v58, %s3766_s9 }
0x1896   :  { %v1725_v39 = vpop.xlane.xlu0 %1724 }
0x1897   :  { %v1727_v41 = vrot.slane %v1725_v39, 1  ;;  %3601 = vrcp.f32 %v1725_v39 }
0x1899   :  { %3603 = vrcp.f32 %v1727_v41 }
0x189a   :  { %v1742_v1 = vpop.permute.xlu0 %1741 }
0x189b   :  { %3170 = vmatmul.mubr.msk.f32.vlgmr.msra.gmra.mrb[6].mxu0 %vm235_vm0, %v1742_v1 }
0x189c   :  { %3345 = vmatpush1.bf16.msra.mxu0 %v3933_v18  ;;  %1886 = vmatprep.mubr.f32.mxu0 %v3765_v10 }
0x189d   :  { %3171 = vmatprep.subr.msk.mxu0 %vm360_vm3, %v4246_v42 }
0x18a0   :  { %3172 = vmatpush1.msk.msra.mxu0 %vm360_vm3, %v4253_v8 }
0x18a1   :  { %v3602_v9 = vpop.eup %3601  ;;  %3367 = vmatprep.subr.bf16.mxu0 %v3884_v40 }
0x18a2   :  { %v1731_v49 = vmul.f32 %v3602_v9, %v3600_v19 }
0x18a3   :  { %v3604_v47 = vpop.eup %3603 }
0x18a4   :  { %v1733_v51 = vmul.f32 %v3604_v47, %v3598_v33  ;;  %v1738_v55 = vmul.f32 %v1734_v23, %v1731_v49 }
0x18a6   :  { %v1739_v52 = vmul.f32 %v1735_v46, %v1733_v51 }
0x18a8   :  { %v1818_v56 = vrot.slane %v1739_v52, 7 }
0x18aa   :  { %v1819_v60 = vsel %vm244_vm1, %v1818_v56, %v1738_v55 }
0x18ab   :  { %3173 = vmatmul.mubr.msk.f32.vlgmr.msra.gmra.mrb[6].mxu0 %vm357_vm4, %v1819_v60 }
0x18ac   :  { %3369 = vmatpush1.bf16.msra.mxu0 %v3886_v44  ;;  %2283 = vmatprep.mubr.f32.mxu0 %v3765_v10 }
0x18ad   :  { %3371 = vmatprep.subr.bf16.mxu0 %v3888_v45 }
0x18b0   :  { %3373 = vmatpush1.bf16.msra.mxu0 %v3898_v59 }
0x18b1   :  { %3375 = vmatprep.subr.bf16.mxu0 %v3902_v62 }
0x18b4   :  { %3377 = vmatpush1.bf16.msra.mxu0 %v3904_v4 }
0x18b5   :  { %3379 = vmatprep.subr.bf16.mxu0 %v3909_v11 }
0x18b8   :  { %3381 = vmatpush1.bf16.msra.mxu0 %v3919_v14 }
0x18b9   :  { %3383 = vmatprep.subr.bf16.mxu0 %v3923_v15 }
0x197e   :  { %v1888_v3 = vpop.f32.mrb[6].mxu0 }
0x197f   :  { %v1893_v5 = vadd.f32 %v1888_v3, %v3977_v37  ;;  %v1890_v32 = vpop.f32.mrb[7].mxu0 }
0x1980   :  { %v1894_v12 = vadd.f32 %v1890_v32, %v3981_v0 }
0x1981   :  { %v3174_v7 = vmul.f32 -1.442695, %v1893_v5 }
0x1982   :  { %v3175_v22 = vmul.f32 -1.442695, %v1894_v12 }
0x1983   :  { %3605 = vpow2.f32 %v3174_v7 }
0x1984   :  { %3607 = vtanh.f32 %v1894_v12 }
0x198d   :  { %v3606_v13 = vpop.eup %3605 }
0x198e   :  { %v1901_v43 = vadd.f32 1.0, %v3606_v13  ;;  %v3608_v16 = vpop.eup %3607 }
0x1990   :  { %3609 = vrcp.f32 %v1901_v43 }
0x1991   :  { %3611 = vpow2.f32 %v3175_v22  ;;  %v1980_v22 = vrot.slane %v4153_v50, 7 }
0x199a   :  { %v3610_v17 = vpop.eup %3609 }
0x199b   :  { %v1909_v21 = vmul.f32 %v3610_v17, %v3608_v16  ;;  %v3612_v24 = vpop.eup %3611  ;;  %v1908_v27 = vmul.f32 %v3610_v17, %v4221_v53 }
0x199c   :  { %v1902_v25 = vadd.f32 1.0, %v3612_v24 }
0x199d   :  { %1911 = vrot.lane.b32.xlu1 %v1909_v21, %s3766_s9 }
0x199e   :  { %3613 = vrcp.f32 %v1902_v25 }
0x19a8   :  { %v3614_v57 = vpop.eup %3613 }
0x1a0f   :  { %v1912_v28 = vpop.permute.xlu1 %1911 }
0x1a10   :  { %v4275_v31 = vadd.f32 %v1912_v28, %v1908_v27  ;;  %v1979_v28 = vrot.slane %v4159_v54, 7 }
0x1a12   :  { %3615 = vtanh.f32 %v4275_v31  ;;  %v1930_v19 = vmul.f32 %v4275_v31, %v3990_v61 }
0x1a1c   :  { %v3616_v33 = vpop.eup %3615 }
0x1a1d   :  { %v4278_v35 = vmul.f32 %v3616_v33, %v3614_v57 }
0x1a1f   :  { %v1929_v20 = vmul.f32 %v4278_v35, %v3992_v63 }
0x1a21   :  { %v1931_v38 = vadd.f32 %v1930_v19, %v1929_v20 }
0x1a23   :  { %1933 = vrot.lane.b32.xlu1 %v1931_v38, %s3766_s9 }
0x1a95   :  { %v1934_v53 = vpop.permute.xlu1 %1933 }
0x1a96   :  { %v1936_v39 = vsel %vm484_vm5, %v1934_v53, 0.0 }
0x1a97   :  { %1937 = vadd.xlane.f32.xlu1 %v1936_v39 }
0x1b24   :  { %v1938_v41 = vpop.xlane.xlu1 %1937 }
0x1b25   :  { %v1940_v1 = vrot.slane %v1938_v41, 1  ;;  %v1943_v46 = vadd.f32 %v1938_v41, %v3878_v30 }
0x1b27   :  { %v1944_v9 = vadd.f32 %v1940_v1, %v3876_v29 }
0x1b29   :  { %v1947_v47 = vrot.slane %v1944_v9, 7 }
0x1b2b   :  { %v1948_v49 = vsel %vm244_vm1, %v1947_v47, %v1943_v46 }
0x1b2c   :  { %v1950_v51 = vsel %vm247_vm2, %v1948_v49, -inf }
0x1b2d   :  { %1951 = vmax.xlane.f32.xlu0 %v1950_v51 }
0x1bba   :  { %v1952_v23 = vpop.xlane.xlu0 %1951 }
0x1bbb   :  { %v1954_v52 = vrot.slane %v1952_v23, 1  ;;  %v1957_v55 = vsub.f32 %v1943_v46, %v1952_v23 }
0x1bbd   :  { %v1958_v56 = vsub.f32 %v1944_v9, %v1954_v52  ;;  %v1959_v60 = vmul.f32 1.442695, %v1957_v55 }
0x1bbf   :  { %v1961_v3 = vmul.f32 1.442695, %v1958_v56 }
0x1bc1   :  { %3617 = vpow2.f32 %v1961_v3 }
0x1bc2   :  { %3619 = vpow2.f32 %v1959_v60 }
0x1bcb   :  { %v3618_v5 = vpop.eup %3617 }
0x1bcc   :  { %v1965_v32 = vrot.slane %v3618_v5, 7  ;;  %v3620_v7 = vpop.eup %3619 }
0x1bce   :  { %v1966_v12 = vsel %vm244_vm1, %v1965_v32, %v3620_v7 }
0x1bcf   :  { %v1968_v13 = vsel %vm247_vm2, %v1966_v12, 0.0 }
0x1bd0   :  { %1969 = vadd.xlane.f32.xlu0 %v1968_v13 }
0x1be6   :  { %1985 = vrot.lane.b32.xlu0 %v4278_v35, %s3766_s9 }
0x1c5d   :  { %v1970_v43 = vpop.xlane.xlu0 %1969 }
0x1c5e   :  { %v1972_v16 = vrot.slane %v1970_v43, 1  ;;  %3621 = vrcp.f32 %v1970_v43 }
0x1c60   :  { %3623 = vrcp.f32 %v1972_v16 }
0x1c61   :  { %v1986_v17 = vpop.permute.xlu0 %1985 }
0x1c62   :  { %3176 = vmatmul.mubr.msk.f32.vlgmr.msra.gmra.mrb[6].mxu1 %vm235_vm0, %v1986_v17 }
0x1c63   :  { %3365 = vmatpush1.bf16.msra.mxu1 %v3933_v18  ;;  %2130 = vmatprep.mubr.f32.mxu1 %v3765_v10 }
0x1c64   :  { %3177 = vmatprep.subr.msk.mxu1 %vm360_vm3, %v4246_v42 }
0x1c67   :  { %3178 = vmatpush1.msk.msra.mxu1 %vm360_vm3, %v4253_v8 }
0x1c68   :  { %v3622_v21 = vpop.eup %3621  ;;  %3387 = vmatprep.subr.bf16.mxu1 %v3884_v40 }
0x1c69   :  { %v1976_v25 = vmul.f32 %v3622_v21, %v3620_v7 }
0x1c6a   :  { %v3624_v24 = vpop.eup %3623 }
0x1c6b   :  { %v1978_v27 = vmul.f32 %v3624_v24, %v3618_v5  ;;  %v1983_v33 = vmul.f32 %v1979_v28, %v1976_v25 }
0x1c6d   :  { %v1984_v57 = vmul.f32 %v1980_v22, %v1978_v27 }
0x1c6f   :  { %v2062_v19 = vrot.slane %v1984_v57, 7 }
0x1c71   :  { %v2063_v20 = vsel %vm244_vm1, %v2062_v19, %v1983_v33 }
0x1c72   :  { %3179 = vmatmul.mubr.msk.f32.vlgmr.msra.gmra.mrb[6].mxu1 %vm357_vm4, %v2063_v20 }
0x1c73   :  { %3389 = vmatpush1.bf16.msra.mxu1 %v3886_v44  ;;  %2529 = vmatprep.mubr.f32.mxu1 %v3765_v10 }
0x1c74   :  { %3391 = vmatprep.subr.bf16.mxu1 %v3888_v45 }
0x1c77   :  { %3393 = vmatpush1.bf16.msra.mxu1 %v3898_v59 }
0x1c78   :  { %3395 = vmatprep.subr.bf16.mxu1 %v3902_v62 }
0x1c7b   :  { %3397 = vmatpush1.bf16.msra.mxu1 %v3904_v4 }
0x1c7c   :  { %3399 = vmatprep.subr.bf16.mxu1 %v3909_v11 }
0x1c7f   :  { %3401 = vmatpush1.bf16.msra.mxu1 %v3919_v14 }
0x1c80   :  { %3403 = vmatprep.subr.bf16.mxu1 %v3923_v15 }
0x1d45   :  { %v2132_v50 = vpop.f32.mrb[6].mxu1 }
0x1d46   :  { %v2137_v54 = vadd.f32 %v2132_v50, %v3977_v37  ;;  %v2134_v38 = vpop.f32.mrb[7].mxu1 }
0x1d47   :  { %v2138_v39 = vadd.f32 %v2134_v38, %v3981_v0 }
0x1d48   :  { %v3180_v53 = vmul.f32 -1.442695, %v2137_v54 }
0x1d49   :  { %v3181_v49 = vmul.f32 -1.442695, %v2138_v39 }
0x1d4a   :  { %3625 = vpow2.f32 %v3180_v53 }
0x1d4b   :  { %3627 = vtanh.f32 %v2138_v39 }
0x1d54   :  { %v3626_v41 = vpop.eup %3625 }
0x1d55   :  { %v2145_v1 = vadd.f32 1.0, %v3626_v41  ;;  %v3628_v9 = vpop.eup %3627 }
0x1d57   :  { %3629 = vrcp.f32 %v2145_v1 }
0x1d58   :  { %3631 = vpow2.f32 %v3181_v49 }
0x1d61   :  { %v3630_v46 = vpop.eup %3629 }
0x1d62   :  { %v2153_v47 = vmul.f32 %v3630_v46, %v3628_v9  ;;  %v3632_v51 = vpop.eup %3631  ;;  %v2152_v52 = vmul.f32 %v3630_v46, %v4275_v31 }
0x1d63   :  { %v2146_v23 = vadd.f32 1.0, %v3632_v51 }
0x1d64   :  { %2155 = vrot.lane.b32.xlu1 %v2153_v47, %s3766_s9 }
0x1d65   :  { %3633 = vrcp.f32 %v2146_v23  ;;  %v4349_v23 = vld [vmem:[%s4551_s0 + $0x18] sm:$0xf] }
0x1d6f   :  { %v3634_v60 = vpop.eup %3633 }
0x1dd6   :  { %v2156_v55 = vpop.permute.xlu1 %2155 }
0x1dd7   :  { %v4319_v56 = vadd.f32 %v2156_v55, %v2152_v52  ;;  %v4355_v55 = vld [vmem:[%s4551_s0 + $0x8] sm:$0xf] }
0x1dd9   :  { %3635 = vtanh.f32 %v4319_v56  ;;  %v2163_v32 = vmul.f32 %v4319_v56, %v3990_v61 }
0x1de3   :  { %v3636_v3 = vpop.eup %3635 }
0x1de4   :  { %v4322_v5 = vmul.f32 %v3636_v3, %v3634_v60 }
0x1de6   :  { %v2162_v7 = vmul.f32 %v4322_v5, %v3992_v63 }
0x1de8   :  { %v2164_v12 = vadd.f32 %v2163_v32, %v2162_v7 }
0x1dea   :  { %2166 = vrot.lane.b32.xlu1 %v2164_v12, %s3766_s9 }
0x1e5c   :  { %v2167_v31 = vpop.permute.xlu1 %2166 }
0x1e5d   :  { %v2169_v13 = vsel %vm484_vm5, %v2167_v31, 0.0 }
0x1e5e   :  { %2170 = vadd.xlane.f32.xlu1 %v2169_v13 }
0x1eeb   :  { %v2171_v43 = vpop.xlane.xlu1 %2170 }
0x1eec   :  { %v2173_v16 = vrot.slane %v2171_v43, 1  ;;  %v2176_v21 = vadd.f32 %v2171_v43, %v3878_v30 }
0x1eee   :  { %v2177_v17 = vadd.f32 %v2173_v16, %v3876_v29 }
0x1ef0   :  { %v2180_v22 = vrot.slane %v2177_v17, 7 }
0x1ef2   :  { %v2181_v24 = vsel %vm244_vm1, %v2180_v22, %v2176_v21 }
0x1ef3   :  { %v2183_v25 = vsel %vm247_vm2, %v2181_v24, -inf }
0x1ef4   :  { %2184 = vmax.xlane.f32.xlu0 %v2183_v25 }
0x1f81   :  { %v2185_v27 = vpop.xlane.xlu0 %2184 }
0x1f82   :  { %v2187_v28 = vrot.slane %v2185_v27, 1  ;;  %v2190_v57 = vsub.f32 %v2176_v21, %v2185_v27 }
0x1f84   :  { %v2191_v33 = vsub.f32 %v2177_v17, %v2187_v28  ;;  %v2192_v19 = vmul.f32 1.442695, %v2190_v57 }
0x1f86   :  { %v2194_v20 = vmul.f32 1.442695, %v2191_v33 }
0x1f88   :  { %3637 = vpow2.f32 %v2194_v20 }
0x1f89   :  { %3639 = vpow2.f32 %v2192_v19 }
0x1f92   :  { %v3638_v50 = vpop.eup %3637 }
0x1f93   :  { %v2198_v54 = vrot.slane %v3638_v50, 7  ;;  %v3640_v38 = vpop.eup %3639 }
0x1f95   :  { %v2199_v53 = vsel %vm244_vm1, %v2198_v54, %v3640_v38 }
0x1f96   :  { %v2201_v39 = vsel %vm247_vm2, %v2199_v53, 0.0 }
0x1f97   :  { %2202 = vadd.xlane.f32.xlu0 %v2201_v39 }
0x1fad   :  { %2215 = vrot.lane.b32.xlu0 %v4322_v5, %s3766_s9 }
0x2024   :  { %v2203_v41 = vpop.xlane.xlu0 %2202 }
0x2025   :  { %v2205_v1 = vrot.slane %v2203_v41, 1  ;;  %3641 = vrcp.f32 %v2203_v41 }
0x2027   :  { %3643 = vrcp.f32 %v2205_v1 }
0x2028   :  { %v2216_v9 = vpop.permute.xlu0 %2215 }
0x2029   :  { %3182 = vmatmul.mubr.msk.f32.vlgmr.msra.gmra.mrb[8].mxu0 %vm235_vm0, %v2216_v9 }
0x202a   :  { %3385 = vmatpush1.bf16.msra.mxu0 %v3933_v18  ;;  %2360 = vmatprep.mubr.f32.mxu0 %v3765_v10 }
0x202b   :  { %3183 = vmatprep.subr.msk.mxu0 %vm360_vm3, %v4246_v42 }
0x202e   :  { %3184 = vmatpush1.msk.msra.mxu0 %vm360_vm3, %v4253_v8 }
0x202f   :  { %v3642_v46 = vpop.eup %3641  ;;  %3407 = vmatprep.subr.bf16.mxu0 %v3884_v40 }
0x2030   :  { %v2209_v49 = vmul.f32 %v3642_v46, %v3640_v38 }
0x2031   :  { %v3644_v47 = vpop.eup %3643 }
0x2032   :  { %v2211_v51 = vmul.f32 %v3644_v47, %v3638_v50  ;;  %v2212_v60 = vmul.f32 %v4355_v55, %v2209_v49 }
0x2034   :  { %v2213_v52 = vmul.f32 %v4349_v23, %v2211_v51 }
0x2036   :  { %v2292_v3 = vrot.slane %v2213_v52, 7 }
0x2038   :  { %v2293_v32 = vsel %vm244_vm1, %v2292_v3, %v2212_v60 }
0x2039   :  { %3185 = vmatmul.mubr.msk.f32.vlgmr.msra.gmra.mrb[8].mxu0 %vm357_vm4, %v2293_v32 }
0x203a   :  { %3409 = vmatpush1.bf16.msra.mxu0 %v3886_v44  ;;  %2763 = vmatprep.mubr.f32.mxu0 %v3765_v10 }
0x203b   :  { %3411 = vmatprep.subr.bf16.mxu0 %v3888_v45 }
0x203e   :  { %3413 = vmatpush1.bf16.msra.mxu0 %v3898_v59 }
0x203f   :  { %3415 = vmatprep.subr.bf16.mxu0 %v3902_v62 }
0x2042   :  { %3417 = vmatpush1.bf16.msra.mxu0 %v3904_v4 }
0x2043   :  { %3419 = vmatprep.subr.bf16.mxu0 %v3909_v11 }
0x2046   :  { %3421 = vmatpush1.bf16.msra.mxu0 %v3919_v14 }
0x2047   :  { %3423 = vmatprep.subr.bf16.mxu0 %v3923_v15 }
0x210c   :  { %v2362_v7 = vpop.f32.mrb[8].mxu0 }
0x210d   :  { %v2367_v12 = vadd.f32 %v2362_v7, %v3977_v37  ;;  %v2364_v31 = vpop.f32.mrb[9].mxu0 }
0x210e   :  { %v2368_v43 = vadd.f32 %v2364_v31, %v3981_v0 }
0x210f   :  { %v3186_v13 = vmul.f32 -1.442695, %v2367_v12 }
0x2110   :  { %v3187_v25 = vmul.f32 -1.442695, %v2368_v43 }
0x2111   :  { %3645 = vpow2.f32 %v3186_v13 }
0x2112   :  { %3647 = vtanh.f32 %v2368_v43 }
0x211b   :  { %v3646_v16 = vpop.eup %3645 }
0x211c   :  { %v2375_v17 = vadd.f32 1.0, %v3646_v16  ;;  %v3648_v21 = vpop.eup %3647 }
0x211e   :  { %3649 = vrcp.f32 %v2375_v17 }
0x211f   :  { %3651 = vpow2.f32 %v3187_v25 }
0x2128   :  { %v3650_v22 = vpop.eup %3649 }
0x2129   :  { %v2383_v24 = vmul.f32 %v3650_v22, %v3648_v21  ;;  %v3652_v27 = vpop.eup %3651  ;;  %v2382_v57 = vmul.f32 %v3650_v22, %v4319_v56 }
0x212a   :  { %v2376_v28 = vadd.f32 1.0, %v3652_v27 }
0x212b   :  { %2385 = vrot.lane.b32.xlu1 %v2383_v24, %s3766_s9 }
0x212c   :  { %3653 = vrcp.f32 %v2376_v28  ;;  %v2456_v28 = vrot.slane %v4349_v23, 1 }
0x2136   :  { %v3654_v20 = vpop.eup %3653 }
0x219d   :  { %v2386_v33 = vpop.permute.xlu1 %2385 }
0x219e   :  { %v4373_v19 = vadd.f32 %v2386_v33, %v2382_v57 }
0x21a0   :  { %3655 = vtanh.f32 %v4373_v19  ;;  %v2404_v38 = vmul.f32 %v4373_v19, %v3990_v61 }
0x21aa   :  { %v3656_v50 = vpop.eup %3655 }
0x21ab   :  { %v4376_v54 = vmul.f32 %v3656_v50, %v3654_v20  ;;  %v2455_v50 = vrot.slane %v4355_v55, 1 }
0x21ad   :  { %v2403_v53 = vmul.f32 %v4376_v54, %v3992_v63 }
0x21af   :  { %v2405_v39 = vadd.f32 %v2404_v38, %v2403_v53 }
0x21b1   :  { %2407 = vrot.lane.b32.xlu1 %v2405_v39, %s3766_s9 }
0x2223   :  { %v2408_v56 = vpop.permute.xlu1 %2407 }
0x2224   :  { %v2410_v41 = vsel %vm484_vm5, %v2408_v56, 0.0 }
0x2225   :  { %2411 = vadd.xlane.f32.xlu1 %v2410_v41 }
0x22b2   :  { %v2412_v1 = vpop.xlane.xlu1 %2411 }
0x22b3   :  { %v2414_v9 = vrot.slane %v2412_v1, 1  ;;  %v2417_v47 = vadd.f32 %v2412_v1, %v3878_v30 }
0x22b5   :  { %v2418_v46 = vadd.f32 %v2414_v9, %v3876_v29 }
0x22b7   :  { %v2421_v49 = vrot.slane %v2418_v46, 7 }
0x22b9   :  { %v2422_v51 = vsel %vm244_vm1, %v2421_v49, %v2417_v47 }
0x22ba   :  { %v2424_v52 = vsel %vm247_vm2, %v2422_v51, -inf }
0x22bb   :  { %2425 = vmax.xlane.f32.xlu0 %v2424_v52 }
0x2348   :  { %v2426_v60 = vpop.xlane.xlu0 %2425 }
0x2349   :  { %v2428_v3 = vrot.slane %v2426_v60, 1  ;;  %v2431_v32 = vsub.f32 %v2417_v47, %v2426_v60 }
0x234b   :  { %v2432_v7 = vsub.f32 %v2418_v46, %v2428_v3  ;;  %v2433_v12 = vmul.f32 1.442695, %v2431_v32 }
0x234d   :  { %v2435_v31 = vmul.f32 1.442695, %v2432_v7 }
0x234f   :  { %3657 = vpow2.f32 %v2435_v31 }
0x2350   :  { %3659 = vpow2.f32 %v2433_v12 }
0x2359   :  { %v3658_v13 = vpop.eup %3657 }
0x235a   :  { %v2439_v43 = vrot.slane %v3658_v13, 7  ;;  %v3660_v16 = vpop.eup %3659 }
0x235c   :  { %v2440_v17 = vsel %vm244_vm1, %v2439_v43, %v3660_v16 }
0x235d   :  { %v2442_v21 = vsel %vm247_vm2, %v2440_v17, 0.0 }
0x235e   :  { %2443 = vadd.xlane.f32.xlu0 %v2442_v21 }
0x2374   :  { %2461 = vrot.lane.b32.xlu0 %v4376_v54, %s3766_s9 }
0x23eb   :  { %v2444_v22 = vpop.xlane.xlu0 %2443 }
0x23ec   :  { %v2446_v24 = vrot.slane %v2444_v22, 1  ;;  %3661 = vrcp.f32 %v2444_v22 }
0x23ee   :  { %3663 = vrcp.f32 %v2446_v24 }
0x23ef   :  { %v2462_v25 = vpop.permute.xlu0 %2461 }
0x23f0   :  { %3188 = vmatmul.mubr.msk.f32.vlgmr.msra.gmra.mrb[8].mxu1 %vm235_vm0, %v2462_v25 }
0x23f1   :  { %3405 = vmatpush1.bf16.msra.mxu1 %v3933_v18  ;;  %2606 = vmatprep.mubr.f32.mxu1 %v3765_v10 }
0x23f2   :  { %3189 = vmatprep.subr.msk.mxu1 %vm360_vm3, %v4246_v42 }
0x23f5   :  { %3190 = vmatpush1.msk.msra.mxu1 %vm360_vm3, %v4253_v8 }
0x23f6   :  { %v3662_v27 = vpop.eup %3661  ;;  %3427 = vmatprep.subr.bf16.mxu1 %v3884_v40 }
0x23f7   :  { %v2450_v33 = vmul.f32 %v3662_v27, %v3660_v16 }
0x23f8   :  { %v3664_v57 = vpop.eup %3663 }
0x23f9   :  { %v2452_v20 = vmul.f32 %v3664_v57, %v3658_v13  ;;  %v2459_v53 = vmul.f32 %v2455_v50, %v2450_v33 }
0x23fb   :  { %v2460_v38 = vmul.f32 %v2456_v28, %v2452_v20 }
0x23fd   :  { %v2538_v39 = vrot.slane %v2460_v38, 7 }
0x23ff   :  { %v2539_v56 = vsel %vm244_vm1, %v2538_v39, %v2459_v53 }
0x2400   :  { %3191 = vmatmul.mubr.msk.f32.vlgmr.msra.gmra.mrb[8].mxu1 %vm357_vm4, %v2539_v56 }
0x2401   :  { %3429 = vmatpush1.bf16.msra.mxu1 %v3886_v44  ;;  %3007 = vmatprep.mubr.f32.mxu1 %v3765_v10 }
0x2402   :  { %3431 = vmatprep.subr.bf16.mxu1 %v3888_v45 }
0x2405   :  { %3433 = vmatpush1.bf16.msra.mxu1 %v3898_v59 }
0x2406   :  { %3435 = vmatprep.subr.bf16.mxu1 %v3902_v62 }
0x2409   :  { %3437 = vmatpush1.bf16.msra.mxu1 %v3904_v4 }
0x240a   :  { %3439 = vmatprep.subr.bf16.mxu1 %v3909_v11 }
0x240d   :  { %3441 = vmatpush1.bf16.msra.mxu1 %v3919_v14 }
0x240e   :  { %3443 = vmatprep.subr.bf16.mxu1 %v3923_v15 }
0x24d3   :  { %v2608_v40 = vpop.f32.mrb[8].mxu1 }
0x24d4   :  { %v2613_v41 = vadd.f32 %v2608_v40, %v3977_v37  ;;  %v2610_v44 = vpop.f32.mrb[9].mxu1 }
0x24d5   :  { %v2614_v45 = vadd.f32 %v2610_v44, %v3981_v0 }
0x24d6   :  { %v3192_v1 = vmul.f32 -1.442695, %v2613_v41 }
0x24d7   :  { %v3193_v11 = vmul.f32 -1.442695, %v2614_v45 }
0x24d8   :  { %3665 = vpow2.f32 %v3192_v1 }
0x24d9   :  { %3667 = vtanh.f32 %v2614_v45  ;;  %v2689_v45 = vrot.slane %v4349_v23, 2 }
0x24e2   :  { %v3666_v9 = vpop.eup %3665 }
0x24e3   :  { %v2621_v59 = vadd.f32 1.0, %v3666_v9  ;;  %v3668_v62 = vpop.eup %3667 }
0x24e5   :  { %3669 = vrcp.f32 %v2621_v59 }
0x24e6   :  { %3671 = vpow2.f32 %v3193_v11 }
0x24ef   :  { %v3670_v4 = vpop.eup %3669 }
0x24f0   :  { %v2629_v46 = vmul.f32 %v3670_v4, %v3668_v62  ;;  %v3672_v14 = vpop.eup %3671  ;;  %v2628_v47 = vmul.f32 %v3670_v4, %v4373_v19  ;;  %v2688_v4 = vrot.slane %v4355_v55, 2 }
0x24f1   :  { %v2622_v15 = vadd.f32 1.0, %v3672_v14 }
0x24f2   :  { %2631 = vrot.lane.b32.xlu1 %v2629_v46, %s3766_s9 }
0x24f3   :  { %3673 = vrcp.f32 %v2622_v15 }
0x24fd   :  { %v3674_v52 = vpop.eup %3673 }
0x2564   :  { %v2632_v49 = vpop.permute.xlu1 %2631 }
0x2565   :  { %v4417_v51 = vadd.f32 %v2632_v49, %v2628_v47 }
0x2567   :  { %3675 = vtanh.f32 %v4417_v51  ;;  %v2639_v32 = vmul.f32 %v4417_v51, %v3990_v61 }
0x2571   :  { %v3676_v60 = vpop.eup %3675 }
0x2572   :  { %v4420_v3 = vmul.f32 %v3676_v60, %v3674_v52 }
0x2574   :  { %v2638_v7 = vmul.f32 %v4420_v3, %v3992_v63 }
0x2576   :  { %v2640_v12 = vadd.f32 %v2639_v32, %v2638_v7 }
0x2578   :  { %2642 = vrot.lane.b32.xlu1 %v2640_v12, %s3766_s9 }
0x25ea   :  { %v2643_v19 = vpop.permute.xlu1 %2642 }
0x25eb   :  { %v2645_v31 = vsel %vm484_vm5, %v2643_v19, 0.0 }
0x25ec   :  { %2646 = vadd.xlane.f32.xlu1 %v2645_v31 }
0x2679   :  { %v2647_v13 = vpop.xlane.xlu1 %2646 }
0x267a   :  { %v2649_v43 = vrot.slane %v2647_v13, 1  ;;  %v2652_v17 = vadd.f32 %v2647_v13, %v3878_v30 }
0x267c   :  { %v2653_v16 = vadd.f32 %v2649_v43, %v3876_v29 }
0x267e   :  { %v2656_v21 = vrot.slane %v2653_v16, 7 }
0x2680   :  { %v2657_v22 = vsel %vm244_vm1, %v2656_v21, %v2652_v17 }
0x2681   :  { %v2659_v24 = vsel %vm247_vm2, %v2657_v22, -inf }
0x2682   :  { %2660 = vmax.xlane.f32.xlu0 %v2659_v24 }
0x270f   :  { %v2661_v25 = vpop.xlane.xlu0 %2660 }
0x2710   :  { %v2663_v27 = vrot.slane %v2661_v25, 1  ;;  %v2666_v28 = vsub.f32 %v2652_v17, %v2661_v25 }
0x2712   :  { %v2667_v57 = vsub.f32 %v2653_v16, %v2663_v27  ;;  %v2668_v33 = vmul.f32 1.442695, %v2666_v28 }
0x2714   :  { %v2670_v20 = vmul.f32 1.442695, %v2667_v57 }
0x2716   :  { %3677 = vpow2.f32 %v2670_v20 }
0x2717   :  { %3679 = vpow2.f32 %v2668_v33 }
0x2720   :  { %v3678_v50 = vpop.eup %3677 }
0x2721   :  { %v2674_v38 = vrot.slane %v3678_v50, 7  ;;  %v3680_v53 = vpop.eup %3679 }
0x2723   :  { %v2675_v39 = vsel %vm244_vm1, %v2674_v38, %v3680_v53 }
0x2724   :  { %v2677_v56 = vsel %vm247_vm2, %v2675_v39, 0.0 }
0x2725   :  { %2678 = vadd.xlane.f32.xlu0 %v2677_v56 }
0x273b   :  { %2695 = vrot.lane.b32.xlu0 %v4420_v3, %s3766_s9 }
0x27b2   :  { %v2679_v40 = vpop.xlane.xlu0 %2678 }
0x27b3   :  { %v2681_v41 = vrot.slane %v2679_v40, 1  ;;  %3681 = vrcp.f32 %v2679_v40 }
0x27b5   :  { %3683 = vrcp.f32 %v2681_v41 }
0x27b6   :  { %v2696_v44 = vpop.permute.xlu0 %2695 }
0x27b7   :  { %3194 = vmatmul.mubr.msk.f32.vlgmr.msra.gmra.mrb[10].mxu0 %vm235_vm0, %v2696_v44 }
0x27b8   :  { %3425 = vmatpush1.bf16.msra.mxu0 %v3933_v18  ;;  %2840 = vmatprep.mubr.f32.mxu0 %v3765_v10 }
0x27b9   :  { %3195 = vmatprep.subr.msk.mxu0 %vm360_vm3, %v4246_v42 }
0x27bc   :  { %3196 = vmatpush1.msk.msra.mxu0 %vm360_vm3, %v4253_v8 }
0x27bd   :  { %v3682_v1 = vpop.eup %3681 }
0x27be   :  { %v2685_v59 = vmul.f32 %v3682_v1, %v3680_v53 }
0x27bf   :  { %v3684_v9 = vpop.eup %3683 }
0x27c0   :  { %v2687_v62 = vmul.f32 %v3684_v9, %v3678_v50  ;;  %v2692_v11 = vmul.f32 %v2688_v4, %v2685_v59 }
0x27c2   :  { %v2693_v46 = vmul.f32 %v2689_v45, %v2687_v62 }
0x27c4   :  { %v2772_v14 = vrot.slane %v2693_v46, 7 }
0x27c6   :  { %v2773_v15 = vsel %vm244_vm1, %v2772_v14, %v2692_v11  ;;  %v3767_v11 = vmov 1983009808  }
0x27c7   :  { %3197 = vmatmul.mubr.msk.f32.vlgmr.msra.gmra.mrb[10].mxu0 %vm357_vm4, %v2773_v15  ;;  %v475_v14 = vunpack.c.l.s4 %v3767_v11 }
0x27c9   :  { %v476_v15 = vunpack.c.0.s8 %v475_v14 }
0x289a   :  { %v2842_v47 = vpop.f32.mrb[10].mxu0 }
0x289b   :  { %v2847_v49 = vadd.f32 %v2842_v47, %v3977_v37  ;;  %v2844_v52 = vpop.f32.mrb[11].mxu0  ;;  %v479_v47 = vsub.s32 %v476_v15, %v3971_v34 }
0x289c   :  { %v2848_v32 = vadd.f32 %v2844_v52, %v3981_v0 }
0x289d   :  { %v3198_v60 = vmul.f32 -1.442695, %v2847_v49  ;;  %v1446_v49 = vrot.slane %v4180_v36, %v479_v47  ;;  %v2398_v52 = vrot.slane %v4376_v54, %v479_v47  ;;  %v2934_v36 = vrot.slane %v4349_v23, 3 }
0x289e   :  { %v3199_v43 = vmul.f32 -1.442695, %v2848_v32 }
0x289f   :  { %3685 = vpow2.f32 %v3198_v60 }
0x28a0   :  { %3687 = vtanh.f32 %v2848_v32 }
0x28a9   :  { %v3686_v7 = vpop.eup %3685 }
0x28aa   :  { %v2855_v12 = vadd.f32 1.0, %v3686_v7  ;;  %v3688_v19 = vpop.eup %3687 }
0x28ac   :  { %3689 = vrcp.f32 %v2855_v12 }
0x28ad   :  { %3691 = vpow2.f32 %v3199_v43 }
0x28b6   :  { %v3690_v31 = vpop.eup %3689 }
0x28b7   :  { %v2863_v13 = vmul.f32 %v3690_v31, %v3688_v19  ;;  %v3692_v16 = vpop.eup %3691  ;;  %v2862_v21 = vmul.f32 %v3690_v31, %v4417_v51 }
0x28b8   :  { %v2856_v17 = vadd.f32 1.0, %v3692_v16 }
0x28b9   :  { %2865 = vrot.lane.b32.xlu1 %v2863_v13, %s3766_s9 }
0x28ba   :  { %3693 = vrcp.f32 %v2856_v17 }
0x28c4   :  { %v3694_v25 = vpop.eup %3693 }
0x292b   :  { %v2866_v22 = vpop.permute.xlu1 %2865 }
0x292c   :  { %v4451_v24 = vadd.f32 %v2866_v22, %v2862_v21 }
0x292e   :  { %3695 = vtanh.f32 %v4451_v24  ;;  %v2884_v57 = vmul.f32 %v4451_v24, %v3990_v61 }
0x2938   :  { %v3696_v27 = vpop.eup %3695 }
0x2939   :  { %v4454_v28 = vmul.f32 %v3696_v27, %v3694_v25 }
0x293b   :  { %v2883_v33 = vmul.f32 %v4454_v28, %v3992_v63 }
0x293d   :  { %v2885_v20 = vadd.f32 %v2884_v57, %v2883_v33  ;;  %v480_v57 = vrot.slane %v3994_v2, %v479_v47  ;;  %v1924_v33 = vrot.slane %v4278_v35, %v479_v47 }
0x293f   :  { %2887 = vrot.lane.b32.xlu1 %v2885_v20, %s3766_s9 }
0x29b1   :  { %v2888_v51 = vpop.permute.xlu1 %2887 }
0x29b2   :  { %v2890_v50 = vsel %vm484_vm5, %v2888_v51, 0.0 }
0x29b3   :  { %2891 = vadd.xlane.f32.xlu1 %v2890_v50 }
0x2a40   :  { %v2892_v38 = vpop.xlane.xlu1 %2891 }
0x2a41   :  { %v2894_v53 = vrot.slane %v2892_v38, 1  ;;  %v2897_v56 = vadd.f32 %v2892_v38, %v3878_v30 }
0x2a43   :  { %v2898_v39 = vadd.f32 %v2894_v53, %v3876_v29 }
0x2a45   :  { %v2901_v40 = vrot.slane %v2898_v39, 7 }
0x2a47   :  { %v2902_v41 = vsel %vm244_vm1, %v2901_v40, %v2897_v56 }
0x2a48   :  { %v2904_v61 = vsel %vm247_vm2, %v2902_v41, -inf }
0x2a49   :  { %2905 = vmax.xlane.f32.xlu0 %v2904_v61 }
0x2ad6   :  { %v2906_v63 = vpop.xlane.xlu0 %2905 }
0x2ad7   :  { %v2908_v44 = vrot.slane %v2906_v63, 1  ;;  %v2911_v1 = vsub.f32 %v2897_v56, %v2906_v63 }
0x2ad9   :  { %v2912_v45 = vsub.f32 %v2898_v39, %v2908_v44  ;;  %v2913_v9 = vmul.f32 1.442695, %v2911_v1 }
0x2adb   :  { %v2915_v59 = vmul.f32 1.442695, %v2912_v45 }
0x2add   :  { %3697 = vpow2.f32 %v2915_v59 }
0x2ade   :  { %3699 = vpow2.f32 %v2913_v9 }
0x2ae7   :  { %v3698_v62 = vpop.eup %3697 }
0x2ae8   :  { %v2919_v4 = vrot.slane %v3698_v62, 7  ;;  %v3700_v46 = vpop.eup %3699 }
0x2aea   :  { %v2920_v29 = vsel %vm244_vm1, %v2919_v4, %v3700_v46 }
0x2aeb   :  { %v2922_v30 = vsel %vm247_vm2, %v2920_v29, 0.0 }
0x2aec   :  { %2923 = vadd.xlane.f32.xlu0 %v2922_v30 }
0x2b02   :  { %2939 = vrot.lane.b32.xlu0 %v4454_v28, %s3766_s9 }
0x2b06   :  { %1447 = vrot.lane.b32.xlu0 %v1446_v49, %s3766_s9 }
0x2b0a   :  { %2399 = vrot.lane.b32.xlu0 %v2398_v52, %s3766_s9 }
0x2b79   :  { %v2924_v60 = vpop.xlane.xlu0 %2923 }
0x2b7a   :  { %v2926_v32 = vrot.slane %v2924_v60, 1  ;;  %3701 = vrcp.f32 %v2924_v60 }
0x2b7c   :  { %3703 = vrcp.f32 %v2926_v32 }
0x2b7d   :  { %v2940_v7 = vpop.permute.xlu0 %2939 }
0x2b7e   :  { %3200 = vmatmul.mubr.msk.f32.vlgmr.msra.gmra.mrb[10].mxu1 %vm235_vm0, %v2940_v7 }
0x2b7f   :  { %3445 = vmatpush1.bf16.msra.mxu1 %v3933_v18  ;;  %3084 = vmatprep.mubr.f32.mxu1 %v3765_v10 }
0x2b80   :  { %3201 = vmatprep.subr.msk.mxu1 %vm360_vm3, %v4246_v42 }
0x2b81   :  { %v1448_v34 = vpop.permute.xlu0 %1447 }
0x2b82   :  { %1450 = vst.msk [vmem:[%s4559_s8 + $0x4] sm:$0x3] %vm484_vm5, %v1448_v34 }
0x2b83   :  { %1683 = vst.msk [vmem:[%s4559_s8 + $0x4] sm:$0x3] %vm726_vm6, %v4224_v58  ;;  %3202 = vmatpush1.msk.msra.mxu1 %vm360_vm3, %v4253_v8  ;;  %v2933_v8 = vrot.slane %v4355_v55, 3 }
0x2b84   :  { %v3702_v10 = vpop.eup %3701 }
0x2b85   :  { %v2400_v18 = vpop.permute.xlu0 %2399  ;;  %v2930_v58 = vmul.f32 %v3702_v10, %v3700_v46 }
0x2b86   :  { %v3704_v42 = vpop.eup %3703  ;;  %2402 = vst.msk [vmem:[%s4559_s8 + $0x8] sm:$0x3] %vm484_vm5, %v2400_v18 }
0x2b87   :  { %2637 = vst.msk [vmem:[%s4559_s8 + $0x8] sm:$0x3] %vm726_vm6, %v4420_v3  ;;  %v2932_v54 = vmul.f32 %v3704_v42, %v3698_v62  ;;  %v2937_v19 = vmul.f32 %v2933_v8, %v2930_v58 }
0x2b89   :  { %v2938_v12 = vmul.f32 %v2934_v36, %v2932_v54 }
0x2b8b   :  { %v3016_v31 = vrot.slane %v2938_v12, 7 }
0x2b8d   :  { %v3017_v23 = vsel %vm244_vm1, %v3016_v31, %v2937_v19 }
0x2b8e   :  { %3203 = vmatmul.mubr.msk.f32.vlgmr.msra.gmra.mrb[10].mxu1 %vm357_vm4, %v3017_v23 }
0x2c61   :  { %v3086_v13 = vpop.f32.mrb[10].mxu1 }
0x2c62   :  { %v3091_v43 = vadd.f32 %v3086_v13, %v3977_v37  ;;  %v3088_v16 = vpop.f32.mrb[11].mxu1  ;;  %v968_v37 = vrot.slane %v4082_v48, %v479_v47 }
0x2c63   :  { %v3092_v21 = vadd.f32 %v3088_v16, %v3981_v0  ;;  %v2878_v0 = vrot.slane %v4454_v28, %v479_v47 }
0x2c64   :  { %v3204_v17 = vmul.f32 -1.442695, %v3091_v43 }
0x2c65   :  { %v3205_v20 = vmul.f32 -1.442695, %v3092_v21 }
0x2c66   :  { %3705 = vpow2.f32 %v3204_v17 }
0x2c67   :  { %3707 = vtanh.f32 %v3092_v21 }
0x2c70   :  { %v3706_v3 = vpop.eup %3705 }
0x2c71   :  { %v3099_v22 = vadd.f32 1.0, %v3706_v3  ;;  %v3708_v55 = vpop.eup %3707 }
0x2c73   :  { %3709 = vrcp.f32 %v3099_v22 }
0x2c74   :  { %3711 = vpow2.f32 %v3205_v20 }
0x2c7d   :  { %v3710_v25 = vpop.eup %3709 }
0x2c7e   :  { %v3107_v27 = vmul.f32 %v3710_v25, %v3708_v55  ;;  %v3712_v51 = vpop.eup %3711  ;;  %v3106_v2 = vmul.f32 %v3710_v25, %v4451_v24 }
0x2c7f   :  { %v3100_v50 = vadd.f32 1.0, %v3712_v51 }
0x2c80   :  { %3109 = vrot.lane.b32.xlu1 %v3107_v27, %s3766_s9 }
0x2c81   :  { %3713 = vrcp.f32 %v3100_v50 }
0x2c84   :  { %481 = vrot.lane.b32.xlu1 %v480_v57, %s3766_s9 }
0x2c88   :  { %969 = vrot.lane.b32.xlu1 %v968_v37, %s3766_s9 }
0x2c8b   :  { %v3714_v24 = vpop.eup %3713 }
0x2c8c   :  { %1925 = vrot.lane.b32.xlu1 %v1924_v33, %s3766_s9 }
0x2c90   :  { %2879 = vrot.lane.b32.xlu1 %v2878_v0, %s3766_s9 }
0x2cf2   :  { %v3110_v38 = vpop.permute.xlu1 %3109 }
0x2cf3   :  { %v3112_v53 = vadd.f32 %v3110_v38, %v3106_v2 }
0x2cf5   :  { %3715 = vtanh.f32 %v3112_v53 }
0x2cf6   :  { %v482_v48 = vpop.permute.xlu1 %481 }
0x2cf7   :  { %485 = vst.msk [vmem:[%s4559_s8] sm:$0x3] %vm484_vm5, %v482_v48 }
0x2cf8   :  { %727 = vst.msk [vmem:[%s4559_s8] sm:$0x3] %vm726_vm6, %v4038_v26 }
0x2cfa   :  { %v970_v35 = vpop.permute.xlu1 %969 }
0x2cfb   :  { %972 = vst.msk [vmem:[%s4559_s8 + $0x2] sm:$0x3] %vm484_vm5, %v970_v35 }
0x2cfc   :  { %1205 = vst.msk [vmem:[%s4559_s8 + $0x2] sm:$0x3] %vm726_vm6, %v4126_v6 }
0x2cfe   :  { %v1926_v28 = vpop.permute.xlu1 %1925 }
0x2cff   :  { %v3716_v39 = vpop.eup %3715  ;;  %1928 = vst.msk [vmem:[%s4559_s8 + $0x6] sm:$0x3] %vm484_vm5, %v1926_v28 }
0x2d00   :  { %2161 = vst.msk [vmem:[%s4559_s8 + $0x6] sm:$0x3] %vm726_vm6, %v4322_v5  ;;  %v3114_v26 = vmul.f32 %v3716_v39, %v3714_v24 }
0x2d02   :  { %v2880_v56 = vpop.permute.xlu1 %2879 }
0x2d03   :  { %2882 = vst.msk [vmem:[%s4559_s8 + $0xa] sm:$0x3] %vm484_vm5, %v2880_v56 }
0x2d04   :  { %3115 = vst.msk [vmem:[%s4559_s8 + $0xa] sm:$0x3] %vm726_vm6, %v3114_v26 }
0x2d05   :  { %3120 = vsyncpa [#allocation4], 1 }
0x2d06   :  { %3121 = vsyncpa [#allocation5], 1 }

</bundles_post_ra>
